<compile_context>
chip_gen: v7x
topology: tpu7x:2x2x1
jax: 0.10.0
libtpu: 0.0.40
codegen_flags: <defaults>
</compile_context>

<pallas_src>
import numpy as np
import jax
import jax.numpy as jnp
from jax import lax
from jax.experimental import pallas as pl
from jax.experimental.pallas import tpu as pltpu


# ----------------------------------------------------------------------------
# Kernel
# ----------------------------------------------------------------------------
def make_ddim_kernel(steps, w_guide, with_noise):
    """Build the kernel; eta==0 variant has no noise input / sigma term."""
    w1 = 1.0 + float(w_guide)          # CFG folded: (1+w)*eps_c - w*eps_u
    unroll = True if steps <= 64 else 8

    if with_noise:
        def kernel(t_ref, cx_ref, ce_ref, sg_ref,              # SMEM (scalar prefetch)
                   x_ref, wbig_ref, cond_ref, freq_ref, n_ref,  # VMEM inputs
                   o_ref):                                      # VMEM output
            Wb = wbig_ref[...]                    # (BC, BC) block-diag conv weight
            freq = freq_ref[...]                  # (BC, 1)  per-channel frequency
            cond_s = w1 * cond_ref[...]           # (BC, S)  guidance pre-scaled once

            def body(k, x):
                t_emb = jnp.sin(t_ref[k] * freq)                  # (BC,1), 8 EUP sins
                h = jnp.dot(Wb, x, preferred_element_type=jnp.float32)  # one MXU push
                eps = h + t_emb + cond_s
                return cx_ref[k] * x + ce_ref[k] * eps + sg_ref[k] * n_ref[k]

            o_ref[...] = lax.fori_loop(0, steps, body, x_ref[...], unroll=unroll)
        return kernel

    def kernel(t_ref, cx_ref, ce_ref,                          # SMEM (scalar prefetch)
               x_ref, wbig_ref, cond_ref, freq_ref,            # VMEM inputs
               o_ref):                                         # VMEM output
        Wb = wbig_ref[...]
        freq = freq_ref[...]
        cond_s = w1 * cond_ref[...]

        def body(k, x):
            t_emb = jnp.sin(t_ref[k] * freq)
            h = jnp.dot(Wb, x, preferred_element_type=jnp.float32)
            eps = h + t_emb + cond_s
            return cx_ref[k] * x + ce_ref[k] * eps

        o_ref[...] = lax.fori_loop(0, steps, body, x_ref[...], unroll=unroll)
    return kernel


def _pick_spatial_tile(S, max_tile=2048):
    """Largest multiple-of-128 divisor of S up to max_tile (or S itself)."""
    if S <= max_tile:
        return S
    t = (max_tile // 128) * 128
    while t >= 128:
        if S % t == 0:
            return t
        t -= 128
    return S


# ----------------------------------------------------------------------------
# Host-side schedule (linear betas, DDIM time sequence, precomputed coeffs)
# ----------------------------------------------------------------------------
def build_schedule(beta, T, steps, eta):
    beta_t = np.linspace(beta[0], beta[1], T, dtype=np.float64)
    alpha_bar = np.cumprod(1.0 - beta_t)                 # alpha_t_bar buffer
    a = T // steps
    time_steps = np.arange(0, T, a) + 1
    time_steps_prev = np.concatenate([[0], time_steps[:-1]])
    order = np.arange(steps - 1, -1, -1)                 # torch iterates i = steps-1 .. 0
    ts = time_steps[order]
    tp = time_steps_prev[order]
    a_t = alpha_bar[ts]
    a_prev = alpha_bar[tp]
    sigma = eta * np.sqrt((1.0 - a_prev) / (1.0 - a_t) * (1.0 - a_t / a_prev))
    coef_x = np.sqrt(a_prev / a_t)
    coef_e = np.sqrt(1.0 - a_prev - sigma ** 2) - np.sqrt(a_prev * (1.0 - a_t) / a_t)
    t_over_T = ts.astype(np.float64) / float(T)
    as_f32 = lambda v: jnp.asarray(v, dtype=jnp.float32)
    return (as_f32(t_over_T), as_f32(coef_x), as_f32(coef_e), as_f32(sigma),
            as_f32(a_t), as_f32(a_prev), jnp.asarray(ts, dtype=jnp.int32))


# ----------------------------------------------------------------------------
# Wrapper
# ----------------------------------------------------------------------------
def ddim_sample(x_nchw, cond_bcs, wconv, t_over_T, coef_x, coef_e, *,
                w, sigma_seq=None, noise=None, max_tile=2048):
    B, C, H, Wd = x_nchw.shape
    S = H * Wd
    BC = B * C
    steps = int(t_over_T.shape[0])
    with_noise = (noise is not None) and (sigma_seq is not None)

    # Sublane-full layout: (B*C, S), channels/batch on sublanes, spatial on lanes.
    x2d = x_nchw.reshape(BC, S).astype(jnp.float32)
    cond2d = cond_bcs.reshape(BC, S).astype(jnp.float32)
    # Block-diagonal weight so the per-batch 1x1 conv is one (BC,BC)@(BC,S) matmul.
    wbig = jnp.kron(jnp.eye(B, dtype=jnp.float32), wconv.astype(jnp.float32))
    # Per-row sinusoid frequency (c+1), c = row % C. Shape (BC, 1).
    freq = jnp.tile(jnp.arange(1, C + 1, dtype=jnp.float32), B).reshape(BC, 1)

    tile_s = _pick_spatial_tile(S, max_tile)
    nt = S // tile_s

    kernel = make_ddim_kernel(steps, w, with_noise)

    vmem_specs = [
        pl.BlockSpec((BC, tile_s), lambda s, *_: (0, s)),          # x_T
        pl.BlockSpec((BC, BC), lambda s, *_: (0, 0)),              # block-diag conv W
        pl.BlockSpec((BC, tile_s), lambda s, *_: (0, s)),          # class conditioning
        pl.BlockSpec((BC, 1), lambda s, *_: (0, 0)),               # sin frequencies
    ]
    scalar_args = [t_over_T, coef_x, coef_e]
    vmem_args = [x2d, wbig, cond2d, freq]
    if with_noise:
        noise2d = noise.reshape(steps, BC, S).astype(jnp.float32)
        vmem_specs.append(pl.BlockSpec((steps, BC, tile_s), lambda s, *_: (0, 0, s)))
        scalar_args.append(sigma_seq)
        vmem_args.append(noise2d)

    out2d = pl.pallas_call(
        kernel,
        out_shape=jax.ShapeDtypeStruct((BC, S), jnp.float32),
        grid_spec=pltpu.PrefetchScalarGridSpec(
            num_scalar_prefetch=len(scalar_args),       # t/T, coef_x, coef_e[, sigma]
            grid=(nt,),                                 # spatial tiles only
            in_specs=vmem_specs,
            out_specs=pl.BlockSpec((BC, tile_s), lambda s, *_: (0, s)),
        ),
        compiler_params=pltpu.CompilerParams(
            dimension_semantics=("parallel",)),         # spatial tiles are independent
    )(*scalar_args, *vmem_args)

    return out2d.reshape(B, C, H, Wd)


# ----------------------------------------------------------------------------
# Pure-JAX reference mirroring DDIMSampler.forward (only_return_x_0=True)
# ----------------------------------------------------------------------------
def ddim_reference(x_nchw, cond_bcs, noise_sbcs, wconv, ts, a_t_seq, a_prev_seq,
                   *, T, w, eta):
    B, C, H, Wd = x_nchw.shape
    S = H * Wd
    x = x_nchw.reshape(B, C, S).astype(jnp.float32)
    c_idx = jnp.arange(C, dtype=jnp.float32).reshape(1, C, 1)
    steps = int(ts.shape[0])
    for k in range(steps):
        a_t = a_t_seq[k]
        a_prev = a_prev_seq[k]
        t_val = ts[k].astype(jnp.float32)
        t_emb = jnp.sin((t_val / T) * (c_idx + 1.0))
        h = jnp.einsum('dc,bcs->bds', wconv, x)
        eps_c = h + t_emb + cond_bcs                 # conditional model call
        eps_u = h + t_emb                            # force_drop_ids=True call
        eps = (1.0 + w) * eps_c - w * eps_u
        sigma = eta * jnp.sqrt((1.0 - a_prev) / (1.0 - a_t) * (1.0 - a_t / a_prev))
        noise_k = noise_sbcs[k] if noise_sbcs is not None else 0.0
        x = (jnp.sqrt(a_prev / a_t) * x
             + (jnp.sqrt(1.0 - a_prev - sigma ** 2)
                - jnp.sqrt(a_prev * (1.0 - a_t) / a_t)) * eps
             + sigma * noise_k)
    return x.reshape(B, C, H, Wd)


# ----------------------------------------------------------------------------
# Demo / self-test
# ----------------------------------------------------------------------------
if __name__ == "__main__":
    key = jax.random.PRNGKey(0)
    k1, k2, k3, k4, k5, k6, k7 = jax.random.split(key, 7)

    B, C, H, Wd = 2, 4, 16, 16
    S = H * Wd
    T, steps = 100, 10
    w_guide = 1.5
    num_classes = 8
    beta = (1e-4, 0.02)

    # inputs matching forward(x_t, atr, obj)
    x_t = jax.random.normal(k1, (B, C, H, Wd), dtype=jnp.float32)
    atr = jax.random.randint(k2, (B,), 0, num_classes)
    obj = jax.random.randint(k3, (B,), 0, num_classes)

    # deterministic synthetic model parameters
    wconv = 0.2 * jax.random.normal(k4, (C, C), dtype=jnp.float32)
    atr_emb = 0.1 * jax.random.normal(k5, (num_classes, C), dtype=jnp.float32)
    obj_emb = 0.1 * jax.random.normal(k6, (num_classes, C), dtype=jnp.float32)

    # class conditioning (glue): embed + broadcast to (B, C, S)
    cond = atr_emb[atr] + obj_emb[obj]
    cond_bcs = jnp.broadcast_to(cond[:, :, None], (B, C, S)).astype(jnp.float32)

    # TODO(synk): torch.randn_like draws fresh noise inside sample_one_step; here
    # per-step Gaussian noise is precomputed on host (only touched when eta > 0).
    noise = jax.random.normal(k7, (steps, B, C, S), dtype=jnp.float32)

    max_diff_all = 0.0
    for eta in (0.0, 0.5):                       # eta=0 -> DDIM (no-noise kernel variant)
        t_over_T, coef_x, coef_e, sigma_seq, a_t_seq, a_prev_seq, ts = \
            build_schedule(beta, T, steps, eta)
        use_noise = eta > 0.0

        out = ddim_sample(
            x_t, cond_bcs, wconv, t_over_T, coef_x, coef_e,
            w=w_guide,
            sigma_seq=sigma_seq if use_noise else None,
            noise=noise if use_noise else None)
        out = jax.block_until_ready(out)

        ref = ddim_reference(
            x_t, cond_bcs, noise if use_noise else None, wconv,
            ts, a_t_seq, a_prev_seq, T=T, w=w_guide, eta=eta)
        ref = jax.block_until_ready(ref)

        assert out.shape == (B, C, H, Wd) and out.dtype == jnp.float32
        max_diff = float(jnp.max(jnp.abs(out - ref)))
        max_diff_all = max(max_diff_all, max_diff)
        assert max_diff < 1e-2, f"mismatch vs reference (eta={eta}): {max_diff}"

    print("KERNEL_OK")
</pallas_src>

<mosaic_0001>
module attributes {stable_mosaic.version = 11 : i64} {
  func.func @kernel(%arg0: i32, %arg1: memref<10xf32, #tpu.memory_space<smem>>, %arg2: memref<10xf32, #tpu.memory_space<smem>>, %arg3: memref<10xf32, #tpu.memory_space<smem>>, %arg4: memref<8x256xf32, #tpu.memory_space<vmem>>, %arg5: memref<8x8xf32, #tpu.memory_space<vmem>>, %arg6: memref<8x256xf32, #tpu.memory_space<vmem>>, %arg7: memref<8x1xf32, #tpu.memory_space<vmem>>, %arg8: memref<8x256xf32, #tpu.memory_space<vmem>>) attributes {dimension_semantics = [#tpu.dimension_semantics<parallel>], iteration_bounds = array<i64: 1>, scalar_prefetch = 3 : i64, scratch_operands = 0 : i64, tpu.core_type = #tpu.core_type<tc>, window_params = [{transform_indices = @transform_0, window_bounds = array<i64: 8, 256>}, {pipeline_mode = #tpu.pipeline_mode<synchronous>, transform_indices = @transform_1, window_bounds = array<i64: 8, 8>}, {transform_indices = @transform_2, window_bounds = array<i64: 8, 256>}, {pipeline_mode = #tpu.pipeline_mode<synchronous>, transform_indices = @transform_3, window_bounds = array<i64: 8, 1>}, {transform_indices = @transform_4, window_bounds = array<i64: 8, 256>}]} {
    %c0 = arith.constant 0 : index
    %c0_0 = arith.constant 0 : index
    %0 = vector.load %arg5[%c0, %c0_0] : memref<8x8xf32, #tpu.memory_space<vmem>>, vector<8x8xf32>
    %c0_1 = arith.constant 0 : index
    %c0_2 = arith.constant 0 : index
    %1 = vector.load %arg7[%c0_1, %c0_2] : memref<8x1xf32, #tpu.memory_space<vmem>>, vector<8x1xf32>
    %c0_3 = arith.constant 0 : index
    %c0_4 = arith.constant 0 : index
    %2 = vector.load %arg6[%c0_3, %c0_4] : memref<8x256xf32, #tpu.memory_space<vmem>>, vector<8x256xf32>
    %cst = arith.constant 2.500000e+00 : f32
    %3 = vector.broadcast %cst : f32 to vector<8x256xf32>
    %4 = arith.mulf %3, %2 : vector<8x256xf32>
    %c0_5 = arith.constant 0 : index
    %c0_6 = arith.constant 0 : index
    %5 = vector.load %arg4[%c0_5, %c0_6] : memref<8x256xf32, #tpu.memory_space<vmem>>, vector<8x256xf32>
    %c0_i32 = arith.constant 0 : i32
    %6 = arith.index_cast %c0_i32 : i32 to index
    %7 = memref.load %arg1[%6] : memref<10xf32, #tpu.memory_space<smem>>
    %8 = vector.broadcast %7 : f32 to vector<8x1xf32>
    %9 = arith.mulf %8, %1 : vector<8x1xf32>
    %10 = math.sin %9 : vector<8x1xf32>
    %cst_7 = arith.constant dense<0.000000e+00> : vector<8x256xf32>
    %11 = tpu.matmul %0, %5, %cst_7 {dimension_numbers = #tpu.dot_dimension_numbers<[1], [0], [0], [1], [0, 0, 1, 1], [], []>} : vector<8x8xf32>, vector<8x256xf32>, vector<8x256xf32> -> vector<8x256xf32>
    %12 = vector.broadcast %10 : vector<8x1xf32> to vector<8x256xf32>
    %13 = arith.addf %11, %12 : vector<8x256xf32>
    %14 = arith.addf %13, %4 : vector<8x256xf32>
    %15 = arith.index_cast %c0_i32 : i32 to index
    %16 = memref.load %arg2[%15] : memref<10xf32, #tpu.memory_space<smem>>
    %17 = vector.broadcast %16 : f32 to vector<8x256xf32>
    %18 = arith.mulf %17, %5 : vector<8x256xf32>
    %19 = arith.index_cast %c0_i32 : i32 to index
    %20 = memref.load %arg3[%19] : memref<10xf32, #tpu.memory_space<smem>>
    %21 = vector.broadcast %20 : f32 to vector<8x256xf32>
    %22 = arith.mulf %21, %14 : vector<8x256xf32>
    %23 = arith.addf %18, %22 : vector<8x256xf32>
    %c1_i32 = arith.constant 1 : i32
    %24 = arith.index_cast %c1_i32 : i32 to index
    %25 = memref.load %arg1[%24] : memref<10xf32, #tpu.memory_space<smem>>
    %26 = vector.broadcast %25 : f32 to vector<8x1xf32>
    %27 = arith.mulf %26, %1 : vector<8x1xf32>
    %28 = math.sin %27 : vector<8x1xf32>
    %cst_8 = arith.constant dense<0.000000e+00> : vector<8x256xf32>
    %29 = tpu.matmul %0, %23, %cst_8 {dimension_numbers = #tpu.dot_dimension_numbers<[1], [0], [0], [1], [0, 0, 1, 1], [], []>} : vector<8x8xf32>, vector<8x256xf32>, vector<8x256xf32> -> vector<8x256xf32>
    %30 = vector.broadcast %28 : vector<8x1xf32> to vector<8x256xf32>
    %31 = arith.addf %29, %30 : vector<8x256xf32>
    %32 = arith.addf %31, %4 : vector<8x256xf32>
    %33 = arith.index_cast %c1_i32 : i32 to index
    %34 = memref.load %arg2[%33] : memref<10xf32, #tpu.memory_space<smem>>
    %35 = vector.broadcast %34 : f32 to vector<8x256xf32>
    %36 = arith.mulf %35, %23 : vector<8x256xf32>
    %37 = arith.index_cast %c1_i32 : i32 to index
    %38 = memref.load %arg3[%37] : memref<10xf32, #tpu.memory_space<smem>>
    %39 = vector.broadcast %38 : f32 to vector<8x256xf32>
    %40 = arith.mulf %39, %32 : vector<8x256xf32>
    %41 = arith.addf %36, %40 : vector<8x256xf32>
    %c2_i32 = arith.constant 2 : i32
    %42 = arith.index_cast %c2_i32 : i32 to index
    %43 = memref.load %arg1[%42] : memref<10xf32, #tpu.memory_space<smem>>
    %44 = vector.broadcast %43 : f32 to vector<8x1xf32>
    %45 = arith.mulf %44, %1 : vector<8x1xf32>
    %46 = math.sin %45 : vector<8x1xf32>
    %cst_9 = arith.constant dense<0.000000e+00> : vector<8x256xf32>
    %47 = tpu.matmul %0, %41, %cst_9 {dimension_numbers = #tpu.dot_dimension_numbers<[1], [0], [0], [1], [0, 0, 1, 1], [], []>} : vector<8x8xf32>, vector<8x256xf32>, vector<8x256xf32> -> vector<8x256xf32>
    %48 = vector.broadcast %46 : vector<8x1xf32> to vector<8x256xf32>
    %49 = arith.addf %47, %48 : vector<8x256xf32>
    %50 = arith.addf %49, %4 : vector<8x256xf32>
    %51 = arith.index_cast %c2_i32 : i32 to index
    %52 = memref.load %arg2[%51] : memref<10xf32, #tpu.memory_space<smem>>
    %53 = vector.broadcast %52 : f32 to vector<8x256xf32>
    %54 = arith.mulf %53, %41 : vector<8x256xf32>
    %55 = arith.index_cast %c2_i32 : i32 to index
    %56 = memref.load %arg3[%55] : memref<10xf32, #tpu.memory_space<smem>>
    %57 = vector.broadcast %56 : f32 to vector<8x256xf32>
    %58 = arith.mulf %57, %50 : vector<8x256xf32>
    %59 = arith.addf %54, %58 : vector<8x256xf32>
    %c3_i32 = arith.constant 3 : i32
    %60 = arith.index_cast %c3_i32 : i32 to index
    %61 = memref.load %arg1[%60] : memref<10xf32, #tpu.memory_space<smem>>
    %62 = vector.broadcast %61 : f32 to vector<8x1xf32>
    %63 = arith.mulf %62, %1 : vector<8x1xf32>
    %64 = math.sin %63 : vector<8x1xf32>
    %cst_10 = arith.constant dense<0.000000e+00> : vector<8x256xf32>
    %65 = tpu.matmul %0, %59, %cst_10 {dimension_numbers = #tpu.dot_dimension_numbers<[1], [0], [0], [1], [0, 0, 1, 1], [], []>} : vector<8x8xf32>, vector<8x256xf32>, vector<8x256xf32> -> vector<8x256xf32>
    %66 = vector.broadcast %64 : vector<8x1xf32> to vector<8x256xf32>
    %67 = arith.addf %65, %66 : vector<8x256xf32>
    %68 = arith.addf %67, %4 : vector<8x256xf32>
    %69 = arith.index_cast %c3_i32 : i32 to index
    %70 = memref.load %arg2[%69] : memref<10xf32, #tpu.memory_space<smem>>
    %71 = vector.broadcast %70 : f32 to vector<8x256xf32>
    %72 = arith.mulf %71, %59 : vector<8x256xf32>
    %73 = arith.index_cast %c3_i32 : i32 to index
    %74 = memref.load %arg3[%73] : memref<10xf32, #tpu.memory_space<smem>>
    %75 = vector.broadcast %74 : f32 to vector<8x256xf32>
    %76 = arith.mulf %75, %68 : vector<8x256xf32>
    %77 = arith.addf %72, %76 : vector<8x256xf32>
    %c4_i32 = arith.constant 4 : i32
    %78 = arith.index_cast %c4_i32 : i32 to index
    %79 = memref.load %arg1[%78] : memref<10xf32, #tpu.memory_space<smem>>
    %80 = vector.broadcast %79 : f32 to vector<8x1xf32>
    %81 = arith.mulf %80, %1 : vector<8x1xf32>
    %82 = math.sin %81 : vector<8x1xf32>
    %cst_11 = arith.constant dense<0.000000e+00> : vector<8x256xf32>
    %83 = tpu.matmul %0, %77, %cst_11 {dimension_numbers = #tpu.dot_dimension_numbers<[1], [0], [0], [1], [0, 0, 1, 1], [], []>} : vector<8x8xf32>, vector<8x256xf32>, vector<8x256xf32> -> vector<8x256xf32>
    %84 = vector.broadcast %82 : vector<8x1xf32> to vector<8x256xf32>
    %85 = arith.addf %83, %84 : vector<8x256xf32>
    %86 = arith.addf %85, %4 : vector<8x256xf32>
    %87 = arith.index_cast %c4_i32 : i32 to index
    %88 = memref.load %arg2[%87] : memref<10xf32, #tpu.memory_space<smem>>
    %89 = vector.broadcast %88 : f32 to vector<8x256xf32>
    %90 = arith.mulf %89, %77 : vector<8x256xf32>
    %91 = arith.index_cast %c4_i32 : i32 to index
    %92 = memref.load %arg3[%91] : memref<10xf32, #tpu.memory_space<smem>>
    %93 = vector.broadcast %92 : f32 to vector<8x256xf32>
    %94 = arith.mulf %93, %86 : vector<8x256xf32>
    %95 = arith.addf %90, %94 : vector<8x256xf32>
    %c5_i32 = arith.constant 5 : i32
    %96 = arith.index_cast %c5_i32 : i32 to index
    %97 = memref.load %arg1[%96] : memref<10xf32, #tpu.memory_space<smem>>
    %98 = vector.broadcast %97 : f32 to vector<8x1xf32>
    %99 = arith.mulf %98, %1 : vector<8x1xf32>
    %100 = math.sin %99 : vector<8x1xf32>
    %cst_12 = arith.constant dense<0.000000e+00> : vector<8x256xf32>
    %101 = tpu.matmul %0, %95, %cst_12 {dimension_numbers = #tpu.dot_dimension_numbers<[1], [0], [0], [1], [0, 0, 1, 1], [], []>} : vector<8x8xf32>, vector<8x256xf32>, vector<8x256xf32> -> vector<8x256xf32>
    %102 = vector.broadcast %100 : vector<8x1xf32> to vector<8x256xf32>
    %103 = arith.addf %101, %102 : vector<8x256xf32>
    %104 = arith.addf %103, %4 : vector<8x256xf32>
    %105 = arith.index_cast %c5_i32 : i32 to index
    %106 = memref.load %arg2[%105] : memref<10xf32, #tpu.memory_space<smem>>
    %107 = vector.broadcast %106 : f32 to vector<8x256xf32>
    %108 = arith.mulf %107, %95 : vector<8x256xf32>
    %109 = arith.index_cast %c5_i32 : i32 to index
    %110 = memref.load %arg3[%109] : memref<10xf32, #tpu.memory_space<smem>>
    %111 = vector.broadcast %110 : f32 to vector<8x256xf32>
    %112 = arith.mulf %111, %104 : vector<8x256xf32>
    %113 = arith.addf %108, %112 : vector<8x256xf32>
    %c6_i32 = arith.constant 6 : i32
    %114 = arith.index_cast %c6_i32 : i32 to index
    %115 = memref.load %arg1[%114] : memref<10xf32, #tpu.memory_space<smem>>
    %116 = vector.broadcast %115 : f32 to vector<8x1xf32>
    %117 = arith.mulf %116, %1 : vector<8x1xf32>
    %118 = math.sin %117 : vector<8x1xf32>
    %cst_13 = arith.constant dense<0.000000e+00> : vector<8x256xf32>
    %119 = tpu.matmul %0, %113, %cst_13 {dimension_numbers = #tpu.dot_dimension_numbers<[1], [0], [0], [1], [0, 0, 1, 1], [], []>} : vector<8x8xf32>, vector<8x256xf32>, vector<8x256xf32> -> vector<8x256xf32>
    %120 = vector.broadcast %118 : vector<8x1xf32> to vector<8x256xf32>
    %121 = arith.addf %119, %120 : vector<8x256xf32>
    %122 = arith.addf %121, %4 : vector<8x256xf32>
    %123 = arith.index_cast %c6_i32 : i32 to index
    %124 = memref.load %arg2[%123] : memref<10xf32, #tpu.memory_space<smem>>
    %125 = vector.broadcast %124 : f32 to vector<8x256xf32>
    %126 = arith.mulf %125, %113 : vector<8x256xf32>
    %127 = arith.index_cast %c6_i32 : i32 to index
    %128 = memref.load %arg3[%127] : memref<10xf32, #tpu.memory_space<smem>>
    %129 = vector.broadcast %128 : f32 to vector<8x256xf32>
    %130 = arith.mulf %129, %122 : vector<8x256xf32>
    %131 = arith.addf %126, %130 : vector<8x256xf32>
    %c7_i32 = arith.constant 7 : i32
    %132 = arith.index_cast %c7_i32 : i32 to index
    %133 = memref.load %arg1[%132] : memref<10xf32, #tpu.memory_space<smem>>
    %134 = vector.broadcast %133 : f32 to vector<8x1xf32>
    %135 = arith.mulf %134, %1 : vector<8x1xf32>
    %136 = math.sin %135 : vector<8x1xf32>
    %cst_14 = arith.constant dense<0.000000e+00> : vector<8x256xf32>
    %137 = tpu.matmul %0, %131, %cst_14 {dimension_numbers = #tpu.dot_dimension_numbers<[1], [0], [0], [1], [0, 0, 1, 1], [], []>} : vector<8x8xf32>, vector<8x256xf32>, vector<8x256xf32> -> vector<8x256xf32>
    %138 = vector.broadcast %136 : vector<8x1xf32> to vector<8x256xf32>
    %139 = arith.addf %137, %138 : vector<8x256xf32>
    %140 = arith.addf %139, %4 : vector<8x256xf32>
    %141 = arith.index_cast %c7_i32 : i32 to index
    %142 = memref.load %arg2[%141] : memref<10xf32, #tpu.memory_space<smem>>
    %143 = vector.broadcast %142 : f32 to vector<8x256xf32>
    %144 = arith.mulf %143, %131 : vector<8x256xf32>
    %145 = arith.index_cast %c7_i32 : i32 to index
    %146 = memref.load %arg3[%145] : memref<10xf32, #tpu.memory_space<smem>>
    %147 = vector.broadcast %146 : f32 to vector<8x256xf32>
    %148 = arith.mulf %147, %140 : vector<8x256xf32>
    %149 = arith.addf %144, %148 : vector<8x256xf32>
    %c8_i32 = arith.constant 8 : i32
    %150 = arith.index_cast %c8_i32 : i32 to index
    %151 = memref.load %arg1[%150] : memref<10xf32, #tpu.memory_space<smem>>
    %152 = vector.broadcast %151 : f32 to vector<8x1xf32>
    %153 = arith.mulf %152, %1 : vector<8x1xf32>
    %154 = math.sin %153 : vector<8x1xf32>
    %cst_15 = arith.constant dense<0.000000e+00> : vector<8x256xf32>
    %155 = tpu.matmul %0, %149, %cst_15 {dimension_numbers = #tpu.dot_dimension_numbers<[1], [0], [0], [1], [0, 0, 1, 1], [], []>} : vector<8x8xf32>, vector<8x256xf32>, vector<8x256xf32> -> vector<8x256xf32>
    %156 = vector.broadcast %154 : vector<8x1xf32> to vector<8x256xf32>
    %157 = arith.addf %155, %156 : vector<8x256xf32>
    %158 = arith.addf %157, %4 : vector<8x256xf32>
    %159 = arith.index_cast %c8_i32 : i32 to index
    %160 = memref.load %arg2[%159] : memref<10xf32, #tpu.memory_space<smem>>
    %161 = vector.broadcast %160 : f32 to vector<8x256xf32>
    %162 = arith.mulf %161, %149 : vector<8x256xf32>
    %163 = arith.index_cast %c8_i32 : i32 to index
    %164 = memref.load %arg3[%163] : memref<10xf32, #tpu.memory_space<smem>>
    %165 = vector.broadcast %164 : f32 to vector<8x256xf32>
    %166 = arith.mulf %165, %158 : vector<8x256xf32>
    %167 = arith.addf %162, %166 : vector<8x256xf32>
    %c9_i32 = arith.constant 9 : i32
    %168 = arith.index_cast %c9_i32 : i32 to index
    %169 = memref.load %arg1[%168] : memref<10xf32, #tpu.memory_space<smem>>
    %170 = vector.broadcast %169 : f32 to vector<8x1xf32>
    %171 = arith.mulf %170, %1 : vector<8x1xf32>
    %172 = math.sin %171 : vector<8x1xf32>
    %cst_16 = arith.constant dense<0.000000e+00> : vector<8x256xf32>
    %173 = tpu.matmul %0, %167, %cst_16 {dimension_numbers = #tpu.dot_dimension_numbers<[1], [0], [0], [1], [0, 0, 1, 1], [], []>} : vector<8x8xf32>, vector<8x256xf32>, vector<8x256xf32> -> vector<8x256xf32>
    %174 = vector.broadcast %172 : vector<8x1xf32> to vector<8x256xf32>
    %175 = arith.addf %173, %174 : vector<8x256xf32>
    %176 = arith.addf %175, %4 : vector<8x256xf32>
    %177 = arith.index_cast %c9_i32 : i32 to index
    %178 = memref.load %arg2[%177] : memref<10xf32, #tpu.memory_space<smem>>
    %179 = vector.broadcast %178 : f32 to vector<8x256xf32>
    %180 = arith.mulf %179, %167 : vector<8x256xf32>
    %181 = arith.index_cast %c9_i32 : i32 to index
    %182 = memref.load %arg3[%181] : memref<10xf32, #tpu.memory_space<smem>>
    %183 = vector.broadcast %182 : f32 to vector<8x256xf32>
    %184 = arith.mulf %183, %176 : vector<8x256xf32>
    %185 = arith.addf %180, %184 : vector<8x256xf32>
    %c10_i32 = arith.constant 10 : i32
    %c0_17 = arith.constant 0 : index
    %c0_18 = arith.constant 0 : index
    %186 = vector.load %arg8[%c0_17, %c0_18] : memref<8x256xf32, #tpu.memory_space<vmem>>, vector<8x256xf32>
    tpu.vector_store %arg8[%c0_17, %c0_18], %185 {strides = array<i32>} : memref<8x256xf32, #tpu.memory_space<vmem>>, vector<8x256xf32>,
    return
  }
  func.func @transform_0(%arg0: i32, %arg1: memref<10xf32, #tpu.memory_space<smem>>, %arg2: memref<10xf32, #tpu.memory_space<smem>>, %arg3: memref<10xf32, #tpu.memory_space<smem>>) -> (i32, i32) {
    %c0_i32 = arith.constant 0 : i32
    %c0_i32_0 = arith.constant 0 : i32
    return %c0_i32, %arg0 : i32, i32
  }
  func.func @transform_1(%arg0: i32, %arg1: memref<10xf32, #tpu.memory_space<smem>>, %arg2: memref<10xf32, #tpu.memory_space<smem>>, %arg3: memref<10xf32, #tpu.memory_space<smem>>) -> (i32, i32) {
    %c0_i32 = arith.constant 0 : i32
    %c0_i32_0 = arith.constant 0 : i32
    %c0_i32_1 = arith.constant 0 : i32
    return %c0_i32, %c0_i32_0 : i32, i32
  }
  func.func @transform_2(%arg0: i32, %arg1: memref<10xf32, #tpu.memory_space<smem>>, %arg2: memref<10xf32, #tpu.memory_space<smem>>, %arg3: memref<10xf32, #tpu.memory_space<smem>>) -> (i32, i32) {
    %c0_i32 = arith.constant 0 : i32
    %c0_i32_0 = arith.constant 0 : i32
    return %c0_i32, %arg0 : i32, i32
  }
  func.func @transform_3(%arg0: i32, %arg1: memref<10xf32, #tpu.memory_space<smem>>, %arg2: memref<10xf32, #tpu.memory_space<smem>>, %arg3: memref<10xf32, #tpu.memory_space<smem>>) -> (i32, i32) {
    %c0_i32 = arith.constant 0 : i32
    %c0_i32_0 = arith.constant 0 : i32
    %c0_i32_1 = arith.constant 0 : i32
    return %c0_i32, %c0_i32_0 : i32, i32
  }
  func.func @transform_4(%arg0: i32, %arg1: memref<10xf32, #tpu.memory_space<smem>>, %arg2: memref<10xf32, #tpu.memory_space<smem>>, %arg3: memref<10xf32, #tpu.memory_space<smem>>) -> (i32, i32) {
    %c0_i32 = arith.constant 0 : i32
    %c0_i32_0 = arith.constant 0 : i32
    return %c0_i32, %arg0 : i32, i32
  }
}

</mosaic_0001>

<bundles_post_ra>
// kernel: tpu_custom_call.1
= control target key start
LH: loop header
LB: loop body
LE: loop exit
PB: predicated region body
PF: predicated region fallthrough
CT: control target
= control target key end

     0   :  { %s3320_s0 = inlined_call_operand.hbm [shape: f32[10], index: 0, kind: input, shape index: {}]   ;;  %s3321_s3 = inlined_call_operand.vmem [shape: f32[8,256], index: 3, kind: input, shape index: {}]   ;;  %s3322_s4 = inlined_call_operand.vmem [shape: f32[8,8], index: 4, kind: input, shape index: {}]   ;;  %s3323_s5 = inlined_call_operand.hbm [shape: f32[8,256], index: 5, kind: input, shape index: {}]   ;;  %s3324_s6 = inlined_call_operand.vmem [shape: f32[8,1], index: 6, kind: input, shape index: {}]   ;;  %s3325_s7 = inlined_call_operand.hbm [shape: f32[8,256], index: 7, kind: output, shape index: {}]   ;;  %s3326_s1 = inlined_call_operand.hbm [shape: f32[10], index: 1, kind: input, shape index: {}]   ;;  %s3327_s2 = inlined_call_operand.hbm [shape: f32[10], index: 2, kind: input, shape index: {}]  }
   0x1   :  { %s2197_s26 = scalar_lea.hbm %s3320_s0, 16 }
   0x2   :  { %p2198_p0 = scmp.ne.s32.totalorder %s3320_s0, %s2197_s26  ;;  %p2201_p1 = scmp.lt.u32.totalorder %s2197_s26, %s3320_s0 }
   0x4   :  { %p2203_p2 = pnand %p2201_p1, %p2198_p0 }
   0x6   :  { %2206 = shalt.err (!%p2203_p2)  }
   0x7   :  { %s2277_s8 = smov [#allocation3]   ;;  %s2207_s13 = scalar_lea.hbm %s3326_s1, 16 }
   0x8   :  { %13 = dma.hbm_to_smem %s3320_s0, 16, %s2277_s8, [#allocation2] }
   0x9   :  { %p2208_p3 = scmp.ne.s32.totalorder %s3326_s1, %s2207_s13  ;;  %p2211_p4 = scmp.lt.u32.totalorder %s2207_s13, %s3326_s1 }
   0xb   :  { %p2213_p5 = pnand %p2211_p4, %p2208_p3 }
   0xd   :  { %2216 = shalt.err (!%p2213_p5)  }
   0xe   :  { %s2278_s18 = smov [#allocation4]   ;;  %s2217_s22 = scalar_lea.hbm %s3327_s2, 16 }
   0xf   :  { %15 = dma.hbm_to_smem %s3326_s1, 16, %s2278_s18, [#allocation2] }
  0x10   :  { %p2218_p6 = scmp.ne.s32.totalorder %s3327_s2, %s2217_s22  ;;  %p2221_p7 = scmp.lt.u32.totalorder %s2217_s22, %s3327_s2 }
  0x12   :  { %p2223_p8 = pnand %p2221_p7, %p2218_p6 }
  0x14   :  { %2226 = shalt.err (!%p2223_p8)  }
  0x15   :  { %s2279_s27 = smov [#allocation5]  }
  0x16   :  { %17 = dma.hbm_to_smem %s3327_s2, 16, %s2279_s27, [#allocation2] }
  0x17   :  { %2271 = dma.done.wait [#allocation2], 48 }
  0x18   :  { %2272 = vsyncadd [#allocation2], 4294967248 }
  0x19   :  { %19 = sfence }
  0x1a   :  { %20 = vsyncpa [#allocation7], 0 }
  0x1b   :  { %21 = vsyncpa [#allocation8], 0  ;;  %s2280_s1 = smov [#allocation6]   ;;  %s2227_s10 = scalar_lea.hbm %s3323_s5, 256 }
  0x1c   :  { %s32_s30 = sshll.u32 %s2280_s1, 4  ;;  %p2228_p9 = scmp.ne.s32.totalorder %s3323_s5, %s2227_s10  ;;  %s33_s30 = int_to_ptr.vmem [resolvable:$true] %s32_s30 }
  0x1d   :  { %p2231_p10 = scmp.lt.u32.totalorder %s2227_s10, %s3323_s5 }
  0x1f   :  { %p2233_p11 = pnand %p2231_p10, %p2228_p9 }
  0x21   :  { %2236 = shalt.err (!%p2233_p11)
}
  0x22   :  { %s2237_s2 = scalar_lea.vmem %s33_s30, 256  ;;  %p2242_p13 = scmp.lt.s32.totalorder %s33_s30, %s33_s30 }
  0x23   :  { %p2238_p12 = scmp.ne.s32.totalorder %s33_s30, %s2237_s2  ;;  %p2243_p0 = scmp.lt.s32.totalorder %s2237_s2, %s2237_s2 }
  0x25   :  { %p2244_p1 = por %p2243_p0, %p2242_p13 }
  0x27   :  { %p2245_p2 = pnand %p2244_p1, %p2238_p12 }
  0x29   :  { %2248 = shalt.err (!%p2245_p2)
}
  0x2a   :  { %35 = dma.hbm_to_vmem [thread:$0]  %s3323_s5, 256, %s33_s30, [#allocation7]  }
  0x2b   :  { %2273 = dma.done.wait [#allocation7], 256  }
  0x2c   :  { %2274 = vsyncadd [#allocation7], 4294967040  ;;  %v2281_v0 = vmov 0.0   ;;  %v2282_v1 = vmov 0   ;;  %s49_s17 = sld [smem:[#allocation3]]  ;;  %s2025_s18 = sld [smem:[#allocation3 + $0x1]] }
  0x2d   :  { %229 = vmatprep.mubr.f32.mxu0 %v2281_v0  ;;  %2150 = vset.pattern.permute.xlu0 %v2282_v1  ;;  %s2049_s19 = sld [smem:[#allocation3 + $0x4]]  ;;  %v48_v2 = vld [vmem:[%s3321_s3 + $0x8] sm:$0xff]  ;;  %v47_v3 = vld [vmem:[%s3321_s3] sm:$0xff]  ;;  %vm161_vm0 = vcmask 64512   ;;  %s2406_s26 = sld [smem:[#allocation3 + $0x6]] }
  0x2e   :  { %424 = vmatprep.mubr.f32.mxu1 %v2281_v0  ;;  %2151 = vset.pattern.permute.xlu1 %v2282_v1  ;;  %v41_v4 = vld [vmem:[%s3322_s4] sm:$0xff]  ;;  %v2283_v40 = vmov 683565275   ;;  %v2284_v42 = vmov 2475754826   ;;  %s2581_s27 = sld [smem:[#allocation3 + $0x8]] }
  0x2f   :  { %165 = vmatprep.subr.mxu0 %v48_v2  ;;  %v2392_v5 = vld [vmem:[%s3324_s6] sm:$0xff]  ;;  %v2285_v44 = vmov 2131351028   ;;  %v2286_v46 = vmov 2102212464   ;;  %s238_s28 = sld [smem:[#allocation4]] }
  0x30   :  { %166 = vmatpush1.msra.mxu0 %v47_v3  ;;  %v2287_v48 = vmov 920167782   ;;  %v2288_v56 = vmov 1326507024   ;;  %s242_s29 = sld [smem:[#allocation5]]  ;;  %s2041_s12 = sld [smem:[#allocation3 + $0x3]] }
  0x31   :  { %2024 = vmatmul.mubr.msk.f32.vlgmr.msra.gmra.mrb[0].mxu0 %vm161_vm0, %v41_v4  ;;  %s2057_s13 = sld [smem:[#allocation3 + $0x5]]  ;;  %s2073_s15 = sld [smem:[#allocation3 + $0x7]] }
  0x32   :  { %v50_v6 = vstv %s49_s17  ;;  %v249_v8 = vstv %s2025_s18  ;;  %619 = vmatprep.mubr.f32.mxu0 %v2281_v0  ;;  %s3109_s16 = sld [smem:[#allocation4 + $0x1]]  ;;  %s2039_s18 = sld [smem:[#allocation4 + $0x2]] }
  0x33   :  { %v2395_v7 = vmul.f32 %v50_v6, %v2392_v5  ;;  %v2399_v9 = vmul.f32 %v249_v8, %v2392_v5  ;;  %v834_v10 = vstv %s2049_s19  ;;  %v1224_v30 = vstv %s2406_s26  ;;  %s3133_s17 = sld [smem:[#allocation5 + $0x1]]  ;;  %s2040_s19 = sld [smem:[#allocation5 + $0x2]] }
  0x34   :  { %v2409_v16 = vmul.f32 %v834_v10, %v2392_v5  ;;  %s2047_s21 = sld [smem:[#allocation4 + $0x3]]  ;;  %s2056_s5 = sld [smem:[#allocation5 + $0x4]] }
  0x35   :  { %v52_v11 = vand.u32 2147483647, %v2395_v7  ;;  %v55_v12 = vand.u32 2139095040, %v2395_v7  ;;  %v251_v13 = vand.u32 2147483647, %v2399_v9  ;;  %v254_v14 = vand.u32 2139095040, %v2399_v9 }
  0x36   :  { %v839_v22 = vand.u32 2139095040, %v2409_v16  ;;  %v836_v34 = vand.u32 2147483647, %v2409_v16  ;;  %vm54_vm14 = vcmp.lt.s32.totalorder %v2395_v7, 0  ;;  %s2048_s22 = sld [smem:[#allocation5 + $0x3]]  ;;  %s2063_s23 = sld [smem:[#allocation4 + $0x5]] }
  0x37   :  { %v56_v15 = vshrl.u32 %v55_v12, 23  ;;  %v59_v17 = vand.u32 8388607, %v52_v11  ;;  %v255_v18 = vshrl.u32 %v254_v14, 23  ;;  %v258_v19 = vand.u32 8388607, %v251_v13 }
  0x38   :  { %v840_v27 = vshrl.u32 %v839_v22, 23  ;;  %vm2523_vm15 = vcmp.le.f32.partialorder %v52_v11, 0.7853982  ;;  %s2064_s24 = sld [smem:[#allocation5 + $0x5]]  ;;  %s2071_s25 = sld [smem:[#allocation4 + $0x6]] }
  0x39   :  { %v2020_v20 = vadd.s32 4294967169, %v56_v15  ;;  %v2026_v21 = vadd.s32 4294967169, %v255_v18  ;;  %v60_v24 = vor.u32 8388608, %v59_v17  ;;  %v259_v25 = vor.u32 8388608, %v258_v19  ;;  %s2072_s26 = sld [smem:[#allocation5 + $0x6]]  ;;  %s2088_s1 = sld [smem:[#allocation5 + $0x8]] }
  0x3a   :  { %v2050_v29 = vadd.s32 4294967169, %v840_v27  ;;  %s2095_s30 = sld [smem:[#allocation4 + $0x9]]  ;;  %s2289_s9 = smov [#allocation9]  }
  0x3b   :  { %v62_v23 = vadd.s32 1, %v2020_v20  ;;  %v261_v26 = vadd.s32 1, %v2026_v21  ;;  %v2418_v35 = vshll.u32 %v60_v24, 8  ;;  %v2422_v38 = vshll.u32 %v259_v25, 8  ;;  %s2096_s8 = sld [smem:[#allocation5 + $0x9]]  ;;  %s2011_s10 = sshll.u32 %s2289_s9, 4  ;;  %s2012_s10 = int_to_ptr.vmem [resolvable:$true] %s2011_s10 }
  0x3c   :  { %v2429_v50 = vadd.s32 1, %v2050_v29  ;;  %s2249_s11 = scalar_lea.vmem %s2012_s10, 256  ;;  %p2254_p4 = scmp.lt.s32.totalorder %s2012_s10, %s2012_s10 }
  0x3d   :  { %vm63_vm1 = vcmp.gt.s32.totalorder %v62_v23, 0  ;;  %vm262_vm2 = vcmp.gt.s32.totalorder %v261_v26, 0  ;;  %p2250_p3 = scmp.ne.s32.totalorder %s2012_s10, %s2249_s11  ;;  %p2255_p5 = scmp.lt.s32.totalorder %s2249_s11, %s2249_s11 }
  0x3e   :  { %v64_v28 = vsel %vm63_vm1, %v62_v23, 0  ;;  %v263_v33 = vsel %vm262_vm2, %v261_v26, 0  ;;  %vm847_vm12 = vcmp.gt.s32.totalorder %v2429_v50, 0 }
  0x3f   :  { %v65_v31 = vshrl.u32 %v64_v28, 5  ;;  %v66_v32 = vand.u32 31, %v64_v28  ;;  %v2420_v36 = vshrl.u32 %v263_v33, 5  ;;  %v265_v37 = vand.u32 31, %v263_v33  ;;  %p2256_p6 = por %p2255_p5, %p2254_p4 }
  0x41   :  { %v67_v39 = vsub.s32 32, %v66_v32  ;;  %v69_v41 = vshll.u32 %v2283_v40, %v66_v32  ;;  %v72_v43 = vshll.u32 %v2284_v42, %v66_v32  ;;  %v75_v45 = vshll.u32 %v2285_v44, %v66_v32  ;;  %p2257_p7 = pnand %p2256_p6, %p2250_p3 }
  0x42   :  { %v78_v47 = vshll.u32 %v2286_v46, %v66_v32  ;;  %v81_v49 = vshll.u32 %v2287_v48, %v66_v32  ;;  %vm84_vm3 = vcmp.lt.s32.totalorder %v65_v31, 1  ;;  %vm85_vm4 = vcmp.lt.s32.totalorder %v65_v31, 2 }
  0x43   :  { %v68_v51 = vshrl.u32 %v2283_v40, %v67_v39  ;;  %v70_v52 = vshrl.u32 %v2284_v42, %v67_v39  ;;  %v73_v53 = vshrl.u32 %v2285_v44, %v67_v39  ;;  %v76_v54 = vshrl.u32 %v2286_v46, %v67_v39 }
  0x44   :  { %v79_v55 = vshrl.u32 %v2287_v48, %v67_v39  ;;  %v82_v57 = vshrl.u32 %v2288_v56, %v67_v39  ;;  %vm87_vm5 = vcmp.lt.s32.totalorder %v65_v31, 4  ;;  %v266_v61 = vsub.s32 32, %v265_v37 }
  0x45   :  { %v71_v58 = vor.u32 %v70_v52, %v69_v41  ;;  %v74_v59 = vor.u32 %v73_v53, %v72_v43  ;;  %v77_v60 = vor.u32 %v76_v54, %v75_v45  ;;  %vm86_vm6 = vcmp.lt.s32.totalorder %v65_v31, 3 }
  0x46   :  { %v80_v62 = vor.u32 %v79_v55, %v78_v47  ;;  %v83_v63 = vor.u32 %v82_v57, %v81_v49  ;;  %v268_v1 = vshll.u32 %v2283_v40, %v265_v37  ;;  %v271_v14 = vshll.u32 %v2284_v42, %v265_v37 }
  0x47   :  { %v88_v2 = vsel %vm84_vm3, %v68_v51, %v71_v58  ;;  %v89_v3 = vsel %vm87_vm5, %v77_v60, 2102212464  ;;  %v92_v4 = vsel %vm84_vm3, %v71_v58, %v74_v59  ;;  %v96_v6 = vsel %vm84_vm3, %v74_v59, %v77_v60 }
  0x48   :  { %v90_v8 = vsel %vm86_vm6, %v74_v59, %v89_v3  ;;  %v93_v10 = vsel %vm87_vm5, %v80_v62, 920167782  ;;  %v97_v12 = vsel %vm87_vm5, %v83_v63, 1326507024  ;;  %v267_v18 = vshrl.u32 %v2283_v40, %v266_v61 }
  0x49   :  { %v94_v15 = vsel %vm86_vm6, %v77_v60, %v93_v10  ;;  %v98_v17 = vsel %vm86_vm6, %v80_v62, %v97_v12  ;;  %v269_v19 = vshrl.u32 %v2284_v42, %v266_v61  ;;  %v91_v20 = vsel %vm85_vm4, %v88_v2, %v90_v8 }
  0x4a   :  { %v95_v21 = vsel %vm85_vm4, %v92_v4, %v94_v15  ;;  %v99_v22 = vsel %vm85_vm4, %v96_v6, %v98_v17  ;;  %v272_v23 = vshrl.u32 %v2285_v44, %v266_v61  ;;  %v274_v32 = vshll.u32 %v2285_v44, %v265_v37 }
  0x4b   :  { %v2449_v24 = vmul.u32.u64.low %v2418_v35, %v99_v22  ;;  %v2450_v25 = vmul.u32.u64.high %v2418_v35, %v99_v22, %v2449_v24  ;;  %v2453_v26 = vmul.u32.u64.low %v2418_v35, %v95_v21  ;;  %v2454_v27 = vmul.u32.u64.high %v2418_v35, %v95_v21, %v2453_v26 }
  0x4c   :  { %v270_v28 = vor.u32 %v269_v19, %v268_v1  ;;  %v273_v29 = vor.u32 %v272_v23, %v271_v14  ;;  %v275_v33 = vshrl.u32 %v2286_v46, %v266_v61  ;;  %v277_v31 = vshll.u32 %v2286_v46, %v265_v37 }
  0x4d   :  { %v278_v39 = vshrl.u32 %v2287_v48, %v266_v61  ;;  %v280_v41 = vshll.u32 %v2287_v48, %v265_v37  ;;  %v281_v43 = vshrl.u32 %v2288_v56, %v266_v61  ;;  %v107_v45 = vmul.u32 %v2418_v35, %v91_v20 }
  0x4e   :  { %v276_v47 = vor.u32 %v275_v33, %v274_v32  ;;  %vm283_vm7 = vcmp.lt.s32.totalorder %v2420_v36, 1  ;;  %vm284_vm8 = vcmp.lt.s32.totalorder %v2420_v36, 2  ;;  %vm109_vm9 = vc.u32 %v2450_v25, %v2453_v26 }
  0x4f   :  { %v110_v49 = vadd.s32 1, %v2454_v27  ;;  %v279_v51 = vor.u32 %v278_v39, %v277_v31  ;;  %vm285_vm10 = vcmp.lt.s32.totalorder %v2420_v36, 3  ;;  %v282_v52 = vor.u32 %v281_v43, %v280_v41 }
  0x50   :  { %vm286_vm11 = vcmp.lt.s32.totalorder %v2420_v36, 4  ;;  %v287_v37 = vsel %vm283_vm7, %v267_v18, %v270_v28  ;;  %v291_v53 = vsel %vm283_vm7, %v270_v28, %v273_v29  ;;  %v295_v57 = vsel %vm283_vm7, %v273_v29, %v276_v47 }
  0x51   :  { %v111_v35 = vsel %vm109_vm9, %v110_v49, %v2454_v27  ;;  %v288_v54 = vsel %vm286_vm11, %v276_v47, 2102212464  ;;  %v292_v55 = vsel %vm286_vm11, %v279_v51, 920167782  ;;  %v296_v61 = vsel %vm286_vm11, %v282_v52, 1326507024 }
  0x52   :  { %v112_v58 = vadd.s32 %v111_v35, %v107_v45  ;;  %v289_v59 = vsel %vm285_vm10, %v273_v29, %v288_v54  ;;  %v293_v60 = vsel %vm285_vm10, %v276_v47, %v292_v55  ;;  %v297_v1 = vsel %vm285_vm10, %v279_v51, %v296_v61 }
  0x53   :  { %v290_v62 = vsel %vm284_vm8, %v287_v37, %v289_v59  ;;  %v294_v63 = vsel %vm284_vm8, %v291_v53, %v293_v60  ;;  %v298_v3 = vsel %vm284_vm8, %v295_v57, %v297_v1  ;;  %v848_v12 = vsel %vm847_vm12, %v2429_v50, 0 }
  0x54   :  { %v113_v2 = vadd.s32 536870912, %v112_v58  ;;  %v2480_v4 = vmul.u32.u64.low %v2422_v38, %v294_v63  ;;  %v2481_v6 = vmul.u32.u64.high %v2422_v38, %v294_v63, %v2480_v4  ;;  %v850_v15 = vand.u32 31, %v848_v12 }
  0x55   :  { %v2485_v8 = vmul.u32.u64.low %v2422_v38, %v298_v3  ;;  %v2486_v10 = vmul.u32.u64.high %v2422_v38, %v298_v3, %v2485_v8  ;;  %v306_v17 = vmul.u32 %v2422_v38, %v290_v62  ;;  %v843_v18 = vand.u32 8388607, %v836_v34 }
  0x56   :  { %v114_v14 = vshrl.u32 %v113_v2, 30  ;;  %v2495_v36 = vmul.f32 %v1224_v30, %v2392_v5  ;;  %v309_v20 = vadd.s32 1, %v2481_v6  ;;  %v851_v21 = vsub.s32 32, %v850_v15 }
  0x57   :  { %vm308_vm13 = vc.u32 %v2486_v10, %v2480_v4  ;;  %v844_v23 = vor.u32 8388608, %v843_v18  ;;  %v2506_v27 = vshrl.u32 %v848_v12, 5  ;;  %v853_v28 = vshll.u32 %v2283_v40, %v850_v15 }
  0x58   :  { %v115_v19 = vshll.u32 %v114_v14, 30  ;;  %v310_v50 = vsel %vm308_vm13, %v309_v20, %v2481_v6  ;;  %v1229_v24 = vand.u32 2139095040, %v2495_v36  ;;  %v856_v29 = vshll.u32 %v2284_v42, %v850_v15 }
  0x59   :  { %v311_v38 = vadd.s32 %v310_v50, %v306_v17  ;;  %v854_v33 = vshrl.u32 %v2284_v42, %v851_v21  ;;  %v857_v31 = vshrl.u32 %v2285_v44, %v851_v21  ;;  %v859_v39 = vshll.u32 %v2285_v44, %v850_v15 }
  0x5a   :  { %v2500_v22 = vsub.s32 %v112_v58, %v115_v19  ;;  %v860_v43 = vshrl.u32 %v2286_v46, %v851_v21  ;;  %v862_v45 = vshll.u32 %v2286_v46, %v850_v15  ;;  %v863_v47 = vshrl.u32 %v2287_v48, %v851_v21 }
  0x5b   :  { %v312_v32 = vadd.s32 536870912, %v311_v38  ;;  %v138_v49 = vsub.s32 4, %v114_v14  ;;  %v865_v52 = vshll.u32 %v2287_v48, %v850_v15  ;;  %v866_v37 = vshrl.u32 %v2288_v56, %v851_v21 }
  0x5c   :  { %v118_v30 = vsub.s32 0, %v2500_v22  ;;  %v108_v35 = vadd.s32 %v2453_v26, %v2450_v25  ;;  %v2529_v55 = vshll.u32 %v844_v23, 8  ;;  %v1230_v57 = vshrl.u32 %v1229_v24, 23 }
  0x5d   :  { %v2517_v51 = vshrl.u32 %v312_v32, 30  ;;  %v852_v59 = vshrl.u32 %v2283_v40, %v851_v21  ;;  %v855_v60 = vor.u32 %v854_v33, %v853_v28  ;;  %v858_v61 = vor.u32 %v857_v31, %v856_v29 }
  0x5e   :  { %v2021_v41 = vmin.u32 %v118_v30, %v2500_v22  ;;  %v861_v63 = vor.u32 %v860_v43, %v859_v39  ;;  %v864_v1 = vor.u32 %v863_v47, %v862_v45  ;;  %vm868_vm1 = vcmp.lt.s32.totalorder %v2506_v27, 1 }
  0x5f   :  { %v314_v58 = vshll.u32 %v2517_v51, 30  ;;  %v139_v11 = vsel %vm54_vm14, %v138_v49, %v114_v14  ;;  %v867_v25 = vor.u32 %v866_v37, %v865_v52  ;;  %vm871_vm2 = vcmp.lt.s32.totalorder %v2506_v27, 4 }
  0x60   :  { %v120_v54 = vclz %v2021_v41  ;;  %vm869_vm4 = vcmp.lt.s32.totalorder %v2506_v27, 2  ;;  %vm870_vm5 = vcmp.lt.s32.totalorder %v2506_v27, 3  ;;  %v873_v26 = vsel %vm871_vm2, %v861_v63, 2102212464 }
  0x61   :  { %v2536_v2 = vsub.s32 %v311_v38, %v314_v58  ;;  %v872_v8 = vsel %vm868_vm1, %v852_v59, %v855_v60  ;;  %v876_v12 = vsel %vm868_vm1, %v855_v60, %v858_v61  ;;  %v877_v18 = vsel %vm871_vm2, %v864_v1, 920167782 }
  0x62   :  { %v2022_v62 = vadd.s32 4294967294, %v120_v54  ;;  %vm253_vm6 = vcmp.lt.s32.totalorder %v2399_v9, 0  ;;  %v874_v20 = vsel %vm870_vm5, %v858_v61, %v873_v26  ;;  %v878_v21 = vsel %vm870_vm5, %v861_v63, %v877_v18 }
  0x63   :  { %v317_v6 = vsub.s32 0, %v2536_v2  ;;  %v880_v50 = vsel %vm868_vm1, %v858_v61, %v861_v63  ;;  %v881_v24 = vsel %vm871_vm2, %v867_v25, 1326507024  ;;  %v141_v30 = vsel %vm2523_vm15, 0, %v139_v11 }
  0x64   :  { %vm2023_vm3 = vcmp.lt.s32.totalorder %v2022_v62, 0  ;;  %v337_v29 = vsub.s32 4, %v2517_v51  ;;  %v2066_v32 = vadd.s32 4294967169, %v1230_v57  ;;  %v875_v39 = vsel %vm869_vm4, %v872_v8, %v874_v20 }
  0x65   :  { %v123_v3 = vsel %vm2023_vm3, 0, %v2022_v62  ;;  %v2027_v19 = vmin.u32 %v317_v6, %v2536_v2  ;;  %v882_v41 = vsel %vm870_vm5, %v864_v1, %v881_v24  ;;  %v307_v57 = vadd.s32 %v2480_v4, %v2486_v10 }
  0x66   :  { %v124_v14 = vsub.s32 32, %v123_v3  ;;  %v125_v15 = vshll.u32 %v2500_v22, %v123_v3  ;;  %v128_v17 = vsub.s32 4294967266, %v123_v3  ;;  %v879_v22 = vsel %vm869_vm4, %v876_v12, %v878_v21 }
  0x67   :  { %v319_v28 = vclz %v2027_v19  ;;  %v883_v45 = vsel %vm869_vm4, %v880_v50, %v882_v41  ;;  %v2573_v47 = vmul.u32.u64.low %v2529_v55, %v879_v22  ;;  %v2574_v49 = vmul.u32.u64.high %v2529_v55, %v879_v22, %v2573_v47 }
  0x68   :  { %v126_v38 = vshrl.u32 %v108_v35, %v124_v14  ;;  %v129_v23 = vadd.s32 127, %v128_v17  ;;  %v2578_v35 = vmul.u32.u64.low %v2529_v55, %v883_v45  ;;  %v2579_v54 = vmul.u32.u64.high %v2529_v55, %v883_v45, %v2578_v35 }
  0x69   :  { %v2028_v43 = vadd.s32 4294967294, %v319_v28  ;;  %v1226_v27 = vand.u32 2147483647, %v2495_v36  ;;  %v1236_v58 = vadd.s32 1, %v2066_v32  ;;  %v145_v60 = vadd.s32 3, %v141_v30 }
  0x6a   :  { %v127_v33 = vor.u32 %v126_v38, %v125_v15  ;;  %v130_v31 = vshll.u32 %v129_v23, 23  ;;  %v891_v62 = vmul.u32 %v2529_v55, %v875_v39  ;;  %v894_v25 = vadd.s32 1, %v2574_v49 }
  0x6b   :  { %vm2029_vm7 = vcmp.lt.s32.totalorder %v2028_v43, 0  ;;  %v338_v4 = vsel %vm253_vm6, %v337_v29, %v2517_v51  ;;  %vm893_vm8 = vc.u32 %v2579_v54, %v2573_v47  ;;  %vm1237_vm9 = vcmp.gt.s32.totalorder %v1236_v58, 0 }
  0x6c   :  { %v131_v52 = vor.u32 4788187, %v130_v31  ;;  %v134_v37 = vcvt.s32.f32 %v127_v33  ;;  %v322_v61 = vsel %vm2029_vm7, 0, %v2028_v43  ;;  %v895_v55 = vsel %vm893_vm8, %v894_v25, %v2574_v49 }
  0x6d   :  { %v323_v63 = vsub.s32 32, %v322_v61  ;;  %v324_v1 = vshll.u32 %v2536_v2, %v322_v61  ;;  %v327_v11 = vsub.s32 4294967266, %v322_v61  ;;  %v1238_v6 = vsel %vm1237_vm9, %v1236_v58, 0 }
  0x6e   :  { %v132_v59 = vand.u32 2147483647, %v131_v52  ;;  %vm2597_vm10 = vcmp.le.f32.partialorder %v251_v13, 0.7853982  ;;  %v896_v12 = vadd.s32 %v895_v55, %v891_v62  ;;  %v1240_v14 = vand.u32 31, %v1238_v6 }
  0x6f   :  { %v325_v10 = vshrl.u32 %v307_v57, %v323_v63  ;;  %v328_v3 = vadd.s32 127, %v327_v11  ;;  %v340_v17 = vsel %vm2597_vm10, 0, %v338_v4  ;;  %v1233_v18 = vand.u32 8388607, %v1226_v27 }
  0x70   :  { %v135_v26 = vmul.f32 %v134_v37, %v132_v59  ;;  %v897_v20 = vadd.s32 536870912, %v896_v12  ;;  %v1241_v21 = vsub.s32 32, %v1240_v14  ;;  %v1614_v50 = vstv %s2581_s27  ;;  %s2079_s27 = sld [smem:[#allocation4 + $0x7]] }
  0x71   :  { %v326_v51 = vor.u32 %v325_v10, %v324_v1  ;;  %v329_v15 = vshll.u32 %v328_v3, 23  ;;  %v2611_v38 = vand.u32 3, %v145_v60  ;;  %v344_v24 = vadd.s32 3, %v340_v17 }
  0x72   :  { %v136_v8 = vxor.u32 2147483648, %v135_v26  ;;  %v2613_v30 = vshrl.u32 %v897_v20, 30  ;;  %v2615_v28 = vshrl.u32 %v1238_v6, 5  ;;  %v1243_v32 = vshll.u32 %v2283_v40, %v1240_v14 }
  0x73   :  { %v330_v23 = vor.u32 4788187, %v329_v15  ;;  %v333_v22 = vcvt.s32.f32 %v326_v51  ;;  %v1246_v33 = vshll.u32 %v2284_v42, %v1240_v14  ;;  %v1244_v53 = vshrl.u32 %v2284_v42, %v1241_v21 }
  0x74   :  { %v137_v19 = vsel %vm54_vm14, %v136_v8, %v135_v26  ;;  %v899_v31 = vshll.u32 %v2613_v30, 30  ;;  %v1247_v39 = vshrl.u32 %v2285_v44, %v1241_v21  ;;  %v1249_v41 = vshll.u32 %v2285_v44, %v1240_v14 }
  0x75   :  { %v140_v13 = vsel %vm2523_vm15, %v2395_v7, %v137_v19  ;;  %v331_v29 = vand.u32 2147483647, %v330_v23  ;;  %vm148_vm11 = vcmp.eq.s32.totalorder %v2611_v38, 0  ;;  %v1250_v45 = vshrl.u32 %v2286_v46, %v1241_v21 }
  0x76   :  { %2152 = vcosq.f32 %v140_v13  ;;  %v1252_v49 = vshll.u32 %v2286_v46, %v1240_v14  ;;  %v1253_v52 = vshrl.u32 %v2287_v48, %v1241_v21  ;;  %vm147_vm12 = vcmp.lt.s32.totalorder %v2611_v38, 2 }
  0x77   :  { %2154 = vsinq.f32 %v140_v13  ;;  %v334_v43 = vmul.f32 %v333_v22, %v331_v29  ;;  %vm151_vm13 = vcmp.eq.s32.totalorder %v2611_v38, 2  ;;  %v2629_v37 = vand.u32 3, %v344_v24 }
  0x78   :  { %v2631_v35 = vsub.s32 %v896_v12, %v899_v31  ;;  %v1234_v57 = vor.u32 8388608, %v1233_v18  ;;  %vm144_vm14 = vweird.f32 %v2395_v7  ;;  %v1254_v59 = vor.u32 %v1253_v52, %v1252_v49 }
  0x79   :  { %v335_v58 = vxor.u32 2147483648, %v334_v43  ;;  %v1255_v60 = vshll.u32 %v2287_v48, %v1240_v14  ;;  %v1256_v61 = vshrl.u32 %v2288_v56, %v1241_v21  ;;  %v1242_v63 = vshrl.u32 %v2283_v40, %v1241_v21 }
  0x7a   :  { %v902_v62 = vsub.s32 0, %v2631_v35  ;;  %v1245_v1 = vor.u32 %v1244_v53, %v1243_v32  ;;  %v2639_v11 = vmul.f32 %v1614_v50, %v2392_v5  ;;  %v1248_v26 = vor.u32 %v1247_v39, %v1246_v33 }
  0x7b   :  { %v336_v25 = vsel %vm253_vm6, %v335_v58, %v334_v43  ;;  %v1251_v4 = vor.u32 %v1250_v45, %v1249_v41  ;;  %vm1261_vm15 = vcmp.lt.s32.totalorder %v2615_v28, 4  ;;  %vm1258_vm1 = vcmp.lt.s32.totalorder %v2615_v28, 1 }
  0x7c   :  { %v339_v10 = vsel %vm2597_vm10, %v2399_v9, %v336_v25  ;;  %v2051_v3 = vmin.u32 %v902_v62, %v2631_v35  ;;  %vm1260_vm2 = vcmp.lt.s32.totalorder %v2615_v28, 3  ;;  %v1257_v5 = vor.u32 %v1256_v61, %v1255_v60 }
  0x7d   :  { %2156 = vcosq.f32 %v339_v10  ;;  %v1263_v55 = vsel %vm1261_vm15, %v1251_v4, 2102212464  ;;  %v1267_v6 = vsel %vm1261_vm15, %v1254_v59, 920167782  ;;  %vm838_vm3 = vcmp.lt.s32.totalorder %v2409_v16, 0 }
  0x7e   :  { %2158 = vsinq.f32 %v339_v10  ;;  %v892_v2 = vadd.s32 %v2573_v47, %v2579_v54  ;;  %v904_v12 = vclz %v2051_v3  ;;  %v1274_v14 = vshll.u32 %v1234_v57, 8 }
  0x7f   :  { %vm1259_vm4 = vcmp.lt.s32.totalorder %v2615_v28, 2  ;;  %v1266_v17 = vsel %vm1258_vm1, %v1245_v1, %v1248_v26  ;;  %v1268_v18 = vsel %vm1260_vm2, %v1251_v4, %v1267_v6  ;;  %v1262_v21 = vsel %vm1258_vm1, %v1242_v63, %v1245_v1 }
  0x80   :  { %v2153_v8 = vpop.eup %2152  ;;  %v2052_v20 = vadd.s32 4294967294, %v904_v12  ;;  %v1264_v47 = vsel %vm1260_vm2, %v1248_v26, %v1263_v55  ;;  %v922_v50 = vsub.s32 4, %v2613_v30  ;;  %v1270_v13 = vsel %vm1258_vm1, %v1248_v26, %v1251_v4 }
  0x81   :  { %v2155_v51 = vpop.eup %2154  ;;  %v152_v15 = vxor.u32 2147483648, %v2153_v8  ;;  %v1271_v23 = vsel %vm1261_vm15, %v1257_v5, 1326507024  ;;  %vm343_vm5 = vweird.f32 %v2399_v9  ;;  %v1269_v24 = vsel %vm1259_vm4, %v1266_v17, %v1268_v18 }
  0x82   :  { %v149_v19 = vxor.u32 2147483648, %v2155_v51  ;;  %vm2053_vm6 = vcmp.lt.s32.totalorder %v2052_v20, 0  ;;  %v1272_v29 = vsel %vm1260_vm2, %v1254_v59, %v1271_v23  ;;  %v1265_v31 = vsel %vm1259_vm4, %v1262_v21, %v1264_v47 }
  0x83   :  { %v153_v54 = vsel %vm151_vm13, %v152_v15, %v2155_v51  ;;  %v907_v33 = vsel %vm2053_vm6, 0, %v2052_v20  ;;  %v1273_v53 = vsel %vm1259_vm4, %v1270_v13, %v1272_v29  ;;  %vm2698_vm7 = vcmp.le.f32.partialorder %v836_v34, 0.7853982 }
  0x84   :  { %v150_v22 = vsel %vm148_vm11, %v2153_v8, %v149_v19  ;;  %v908_v41 = vsub.s32 32, %v907_v33  ;;  %v909_v43 = vshll.u32 %v2631_v35, %v907_v33  ;;  %v912_v45 = vsub.s32 4294967266, %v907_v33 }
  0x85   :  { %v154_v32 = vsel %vm147_vm12, %v150_v22, %v153_v54  ;;  %v2689_v49 = vmul.u32.u64.low %v1274_v14, %v1273_v53  ;;  %v2690_v52 = vmul.u32.u64.high %v1274_v14, %v1273_v53, %v2689_v49  ;;  %v1619_v59 = vand.u32 2139095040, %v2639_v11 }
  0x86   :  { %v155_v39 = vsel %vm144_vm14, nan, %v154_v32  ;;  %v2692_v38 = vmul.u32.u64.low %v1274_v14, %v1269_v24  ;;  %v2693_v57 = vmul.u32.u64.high %v1274_v14, %v1269_v24, %v2692_v38  ;;  %v910_v7 = vshrl.u32 %v892_v2, %v908_v41 }
  0x87   :  { %158 = vperm.xlu0 %2150, %v155_v39   ;;  %v913_v58 = vadd.s32 127, %v912_v45  ;;  %v2157_v35 = vpop.eup %2156  ;;  %vm347_vm8 = vcmp.eq.s32.totalorder %v2629_v37, 0  ;;  %vm350_vm9 = vcmp.eq.s32.totalorder %v2629_v37, 2  ;;  %v923_v60 = vsel %vm838_vm3, %v922_v50, %v2613_v30 }
  0x88   :  { %v1281_v61 = vmul.u32 %v1274_v14, %v1265_v31  ;;  %v2159_v62 = vpop.eup %2158  ;;  %v351_v63 = vxor.u32 2147483648, %v2157_v35  ;;  %v911_v34 = vor.u32 %v910_v7, %v909_v43  ;;  %v1620_v25 = vshrl.u32 %v1619_v59, 23 }
  0x89   :  { %v914_v1 = vshll.u32 %v913_v58, 23  ;;  %vm346_vm10 = vcmp.lt.s32.totalorder %v2629_v37, 2  ;;  %v348_v26 = vxor.u32 2147483648, %v2159_v62  ;;  %vm1283_vm11 = vc.u32 %v2690_v52, %v2692_v38 }
  0x8a   :  { %v1284_v4 = vadd.s32 1, %v2693_v57  ;;  %v352_v10 = vsel %vm350_vm9, %v351_v63, %v2159_v62  ;;  %v918_v5 = vcvt.s32.f32 %v911_v34  ;;  %v2082_v55 = vadd.s32 4294967169, %v1620_v25 }
  0x8b   :  { %v915_v3 = vor.u32 4788187, %v914_v1  ;;  %v349_v30 = vsel %vm347_vm8, %v2157_v35, %v348_v26  ;;  %v925_v6 = vsel %vm2698_vm7, 0, %v923_v60  ;;  %v1616_v47 = vand.u32 2147483647, %v2639_v11 }
  0x8c   :  { %v1285_v8 = vsel %vm1283_vm11, %v1284_v4, %v2693_v57  ;;  %v353_v2 = vsel %vm346_vm10, %v349_v30, %v352_v10  ;;  %v1626_v51 = vadd.s32 1, %v2082_v55  ;;  %v929_v19 = vadd.s32 3, %v925_v6 }
  0x8d   :  { %v916_v12 = vand.u32 2147483647, %v915_v3  ;;  %v1286_v14 = vadd.s32 %v1285_v8, %v1281_v61  ;;  %v354_v15 = vsel %vm343_vm5, nan, %v353_v2  ;;  %v1623_v33 = vand.u32 8388607, %v1616_v47 }
  0x8e   :  { %357 = vperm.xlu0 %2150, %v354_v15   ;;  %vm1627_vm12 = vcmp.gt.s32.totalorder %v1626_v51, 0  ;;  %v2728_v22 = vand.u32 3, %v929_v19  ;;  %vm928_vm6 = vweird.f32 %v2409_v16  ;;  %vm1228_vm8 = vcmp.lt.s32.totalorder %v2495_v36, 0 }
  0x8f   :  { %v919_v17 = vmul.f32 %v918_v5, %v916_v12  ;;  %v1287_v18 = vadd.s32 536870912, %v1286_v14  ;;  %v1628_v20 = vsel %vm1627_vm12, %v1626_v51, 0  ;;  %v1624_v61 = vor.u32 8388608, %v1623_v33 }
  0x90   :  { %v1630_v54 = vand.u32 31, %v1628_v20  ;;  %v1629_v53 = vshrl.u32 %v1628_v20, 5  ;;  %vm931_vm13 = vcmp.lt.s32.totalorder %v2728_v22, 2  ;;  %vm932_vm14 = vcmp.eq.s32.totalorder %v2728_v22, 0 }
  0x91   :  { %v920_v37 = vxor.u32 2147483648, %v919_v17  ;;  %v2719_v21 = vshrl.u32 %v1287_v18, 30  ;;  %vm935_vm1 = vcmp.eq.s32.totalorder %v2728_v22, 2  ;;  %v1282_v5 = vadd.s32 %v2692_v38, %v2690_v52 }
  0x92   :  { %v1631_v23 = vsub.s32 32, %v1630_v54  ;;  %v1633_v24 = vshll.u32 %v2283_v40, %v1630_v54  ;;  %v1636_v29 = vshll.u32 %v2284_v42, %v1630_v54  ;;  %v1639_v31 = vshll.u32 %v2285_v44, %v1630_v54 }
  0x93   :  { %v921_v50 = vsel %vm838_vm3, %v920_v37, %v919_v17  ;;  %v1289_v13 = vshll.u32 %v2719_v21, 30  ;;  %v1642_v49 = vshll.u32 %v2286_v46, %v1630_v54  ;;  %v1645_v58 = vshll.u32 %v2287_v48, %v1630_v54 }
  0x94   :  { %v924_v9 = vsel %vm2698_vm7, %v2409_v16, %v921_v50  ;;  %v1634_v39 = vshrl.u32 %v2284_v42, %v1631_v23  ;;  %v1637_v41 = vshrl.u32 %v2285_v44, %v1631_v23  ;;  %v1640_v45 = vshrl.u32 %v2286_v46, %v1631_v23 }
  0x95   :  { %2160 = vcosq.f32 %v924_v9  ;;  %v2732_v32 = vsub.s32 %v1286_v14, %v1289_v13  ;;  %v1643_v7 = vshrl.u32 %v2287_v48, %v1631_v23  ;;  %v1646_v60 = vshrl.u32 %v2288_v56, %v1631_v23 }
  0x96   :  { %2162 = vsinq.f32 %v924_v9  ;;  %v1635_v57 = vor.u32 %v1634_v39, %v1633_v24  ;;  %v1638_v28 = vor.u32 %v1637_v41, %v1636_v29  ;;  %v1641_v35 = vor.u32 %v1640_v45, %v1639_v31 }
  0x97   :  { %v1292_v43 = vsub.s32 0, %v2732_v32  ;;  %v1644_v62 = vor.u32 %v1643_v7, %v1642_v49  ;;  %vm1648_vm15 = vcmp.lt.s32.totalorder %v1629_v53, 1  ;;  %v1632_v34 = vshrl.u32 %v2283_v40, %v1631_v23 }
  0x98   :  { %vm1650_vm2 = vcmp.lt.s32.totalorder %v1629_v53, 3  ;;  %v1647_v1 = vor.u32 %v1646_v60, %v1645_v58  ;;  %vm1649_vm3 = vcmp.lt.s32.totalorder %v1629_v53, 2  ;;  %vm1651_vm4 = vcmp.lt.s32.totalorder %v1629_v53, 4 }
  0x99   :  { %v2067_v59 = vmin.u32 %v1292_v43, %v2732_v32  ;;  %v1656_v25 = vsel %vm1648_vm15, %v1635_v57, %v1638_v28  ;;  %v1653_v4 = vsel %vm1651_vm4, %v1641_v35, 2102212464  ;;  %v1657_v10 = vsel %vm1651_vm4, %v1644_v62, 920167782 }
  0x9a   :  { %v1660_v3 = vsel %vm1648_vm15, %v1638_v28, %v1641_v35  ;;  %v1658_v55 = vsel %vm1650_vm2, %v1641_v35, %v1657_v10  ;;  %v1661_v30 = vsel %vm1651_vm4, %v1647_v1, 1326507024  ;;  %v1664_v6 = vshll.u32 %v1624_v61, 8 }
  0x9b   :  { %v1294_v63 = vclz %v2067_v59  ;;  %v1652_v2 = vsel %vm1648_vm15, %v1632_v34, %v1635_v57  ;;  %v1654_v12 = vsel %vm1650_vm2, %v1638_v28, %v1653_v4  ;;  %v1662_v14 = vsel %vm1650_vm2, %v1644_v62, %v1661_v30 }
  0x9c   :  { %v1659_v18 = vsel %vm1649_vm3, %v1656_v25, %v1658_v55  ;;  %v1663_v19 = vsel %vm1649_vm3, %v1660_v3, %v1662_v14  ;;  %v1655_v33 = vsel %vm1649_vm3, %v1652_v2, %v1654_v12  ;;  %v1312_v22 = vsub.s32 4, %v2719_v21 }
  0x9d   :  { %v2068_v26 = vadd.s32 4294967294, %v1294_v63  ;;  %v2764_v50 = vmul.u32.u64.low %v1664_v6, %v1663_v19  ;;  %v2765_v13 = vmul.u32.u64.high %v1664_v6, %v1663_v19, %v2764_v50  ;;  %v1671_v49 = vmul.u32 %v1664_v6, %v1655_v33 }
  0x9e   :  { %vm1227_vm9 = vcmp.le.f32.partialorder %v1226_v27, 0.7853982  ;;  %v1313_v35 = vsel %vm1228_vm8, %v1312_v22, %v2719_v21  ;;  %vm1618_vm15 = vcmp.lt.s32.totalorder %v2639_v11, 0  ;;  %v43_v22 = vld [vmem:[#allocation6] sm:$0xff] }
  0x9f   :  { %v2161_v8 = vpop.eup %2160  ;;  %vm2069_vm5 = vcmp.lt.s32.totalorder %v2068_v26, 0  ;;  %v1315_v34 = vsel %vm1227_vm9, 0, %v1313_v35 }
  0xa0   :  { %v2163_v51 = vpop.eup %2162  ;;  %v936_v15 = vxor.u32 2147483648, %v2161_v8  ;;  %v1297_v17 = vsel %vm2069_vm5, 0, %v2068_v26  ;;  %v1319_v25 = vadd.s32 3, %v1315_v34  ;;  %vm1708_vm5 = vweird.f32 %v2639_v11  ;;  %v2192_v34 = vld [vmem:[%s3321_s3] sm:$0xff] }
  0xa1   :  { %v933_v52 = vxor.u32 2147483648, %v2163_v51  ;;  %v1298_v38 = vsub.s32 32, %v1297_v17  ;;  %v1299_v20 = vshll.u32 %v2732_v32, %v1297_v17  ;;  %v1302_v37 = vsub.s32 4294967266, %v1297_v17 }
  0xa2   :  { %v937_v54 = vsel %vm935_vm1, %v936_v15, %v2163_v51  ;;  %v2772_v32 = vmul.u32.u64.low %v1664_v6, %v1659_v18  ;;  %v2773_v31 = vmul.u32.u64.high %v1664_v6, %v1659_v18, %v2772_v32  ;;  %v1320_v10 = vand.u32 3, %v1319_v25 }
  0xa3   :  { %v934_v23 = vsel %vm932_vm14, %v2161_v8, %v933_v52  ;;  %v1300_v9 = vshrl.u32 %v1282_v5, %v1298_v38  ;;  %v1303_v24 = vadd.s32 127, %v1302_v37  ;;  %vm1318_vm14 = vweird.f32 %v2495_v36 }
  0xa4   :  { %v938_v29 = vsel %vm931_vm13, %v934_v23, %v937_v54  ;;  %vm1673_vm7 = vc.u32 %v2765_v13, %v2772_v32  ;;  %v1674_v57 = vadd.s32 1, %v2773_v31  ;;  %vm1325_vm10 = vcmp.eq.s32.totalorder %v1320_v10, 2 }
  0xa5   :  { %v939_v16 = vsel %vm928_vm6, nan, %v938_v29  ;;  %v1301_v39 = vor.u32 %v1300_v9, %v1299_v20  ;;  %v1304_v41 = vshll.u32 %v1303_v24, 23  ;;  %vm1322_vm11 = vcmp.eq.s32.totalorder %v1320_v10, 0 }
  0xa6   :  { %942 = vperm.xlu0 %2150, %v939_v16   ;;  %v1675_v53 = vsel %vm1673_vm7, %v1674_v57, %v2773_v31  ;;  %vm1321_vm12 = vcmp.lt.s32.totalorder %v1320_v10, 2  ;;  %v1672_v8 = vadd.s32 %v2772_v32, %v2765_v13  ;;  %vm1617_vm1 = vcmp.le.f32.partialorder %v1616_v47, 0.7853982 }
  0xa7   :  { %v1305_v43 = vor.u32 4788187, %v1304_v41  ;;  %v1308_v45 = vcvt.s32.f32 %v1301_v39  ;;  %v1676_v58 = vadd.s32 %v1675_v53, %v1671_v49  ;;  %v44_v53 = vld [vmem:[#allocation6 + $0x8] sm:$0xff] }
  0xa9   :  { %v1306_v28 = vand.u32 2147483647, %v1305_v43  ;;  %v1677_v60 = vadd.s32 536870912, %v1676_v58 }
  0xab   :  { %v1309_v7 = vmul.f32 %v1308_v45, %v1306_v28  ;;  %v1678_v62 = vshrl.u32 %v1677_v60, 30  ;;  %v2793_v60 = vmul.f32 2.5, %v44_v53 }
  0xad   :  { %v1310_v59 = vxor.u32 2147483648, %v1309_v7  ;;  %v1679_v1 = vshll.u32 %v1678_v62, 30  ;;  %v1702_v13 = vsub.s32 4, %v1678_v62 }
  0xaf   :  { %v1311_v61 = vsel %vm1228_vm8, %v1310_v59, %v1309_v7  ;;  %v1680_v26 = vsub.s32 %v1676_v58, %v1679_v1  ;;  %v1703_v24 = vsel %vm1618_vm15, %v1702_v13, %v1678_v62  ;;  %v2791_v7 = vmul.f32 2.5, %v43_v22 }
  0xb0   :  { %v1314_v63 = vsel %vm1227_vm9, %v2495_v36, %v1311_v61  ;;  %v1705_v32 = vsel %vm1617_vm1, 0, %v1703_v24  ;;  %v239_v58 = vstv %s238_s28  ;;  %v1419_v24 = vstv %s2073_s15  ;;  %s2080_s28 = sld [smem:[#allocation5 + $0x7]] }
  0xb1   :  { %2164 = vcosq.f32 %v1314_v63  ;;  %v1682_v4 = vsub.s32 0, %v1680_v26  ;;  %v1709_v31 = vadd.s32 3, %v1705_v32  ;;  %v240_v1 = vmul.f32 %v2192_v34, %v239_v58 }
  0xb2   :  { %2166 = vsinq.f32 %v1314_v63 }
  0xb3   :  { %v2083_v3 = vmin.u32 %v1682_v4, %v1680_v26  ;;  %v1710_v16 = vand.u32 3, %v1709_v31 }
  0xb5   :  { %v1684_v5 = vclz %v2083_v3  ;;  %vm1715_vm2 = vcmp.eq.s32.totalorder %v1710_v16, 2  ;;  %vm1712_vm3 = vcmp.eq.s32.totalorder %v1710_v16, 0  ;;  %vm1711_vm4 = vcmp.lt.s32.totalorder %v1710_v16, 2 }
  0xb7   :  { %v2084_v27 = vadd.s32 4294967294, %v1684_v5 }
  0xb9   :  { %vm2085_vm13 = vcmp.lt.s32.totalorder %v2084_v27, 0 }
  0xba   :  { %v1687_v12 = vsel %vm2085_vm13, 0, %v2084_v27 }
  0xbb   :  { %v2165_v55 = vpop.eup %2164  ;;  %v1688_v51 = vsub.s32 32, %v1687_v12  ;;  %v1689_v15 = vshll.u32 %v1680_v26, %v1687_v12  ;;  %v1692_v17 = vsub.s32 4294967266, %v1687_v12  ;;  %v2193_v26 = vld [vmem:[%s3321_s3 + $0x8] sm:$0xff]  ;;  %s2033_s3 = sld [smem:[#allocation3 + $0x2]] }
  0xbc   :  { %v2167_v30 = vpop.eup %2166  ;;  %v1326_v21 = vxor.u32 2147483648, %v2165_v55  ;;  %v241_v4 = vmul.f32 %v2193_v26, %v239_v58 }
  0xbd   :  { %v1323_v6 = vxor.u32 2147483648, %v2167_v30  ;;  %v1690_v52 = vshrl.u32 %v1672_v8, %v1688_v51  ;;  %v1693_v38 = vadd.s32 127, %v1692_v17  ;;  %v2820_v8 = vld [vmem:[%s3324_s6] sm:$0xff]  ;;  %s3046_s6 = sld [smem:[#allocation3 + $0x9]] }
  0xbe   :  { %v1327_v2 = vsel %vm1325_vm10, %v1326_v21, %v2167_v30  ;;  %v2812_v30 = vld [vmem:[%s3322_s4] sm:$0xff] }
  0xbf   :  { %v1324_v14 = vsel %vm1322_vm11, %v2165_v55, %v1323_v6  ;;  %v1691_v20 = vor.u32 %v1690_v52, %v1689_v15  ;;  %v1694_v37 = vshll.u32 %v1693_v38, 23  ;;  %v639_v6 = vstv %s2041_s12 }
  0xc0   :  { %v1328_v18 = vsel %vm1321_vm12, %v1324_v14, %v1327_v2  ;;  %v2826_v12 = vmul.f32 %v2820_v8, %v639_v6  ;;  %v1029_v14 = vstv %s2057_s13 }
  0xc1   :  { %v1329_v19 = vsel %vm1318_vm14, nan, %v1328_v18  ;;  %v1695_v54 = vor.u32 4788187, %v1694_v37  ;;  %v1698_v50 = vcvt.s32.f32 %v1691_v20  ;;  %v444_v21 = vstv %s2033_s3 }
  0xc2   :  { %1332 = vperm.xlu0 %2150, %v1329_v19   ;;  %v2823_v2 = vmul.f32 %v2820_v8, %v444_v21  ;;  %v2829_v51 = vmul.f32 %v2820_v8, %v1029_v14  ;;  %v641_v18 = vand.u32 2147483647, %v2826_v12  ;;  %v644_v19 = vand.u32 2139095040, %v2826_v12 }
  0xc3   :  { %v1696_v23 = vand.u32 2147483647, %v1695_v54 }
  0xc4   :  { %v446_v15 = vand.u32 2147483647, %v2823_v2  ;;  %v449_v17 = vand.u32 2139095040, %v2823_v2  ;;  %v645_v20 = vshrl.u32 %v644_v19, 23  ;;  %v648_v37 = vand.u32 8388607, %v641_v18 }
  0xc5   :  { %v1699_v9 = vmul.f32 %v1698_v50, %v1696_v23  ;;  %v1034_v54 = vand.u32 2139095040, %v2829_v51  ;;  %v1031_v32 = vand.u32 2147483647, %v2829_v51 }
  0xc6   :  { %v450_v52 = vshrl.u32 %v449_v17, 23  ;;  %v453_v38 = vand.u32 8388607, %v446_v15  ;;  %v2042_v23 = vadd.s32 4294967169, %v645_v20 }
  0xc7   :  { %v1700_v36 = vxor.u32 2147483648, %v1699_v9  ;;  %v1035_v13 = vshrl.u32 %v1034_v54, 23 }
  0xc8   :  { %v2034_v50 = vadd.s32 4294967169, %v450_v52 }
  0xc9   :  { %v1701_v29 = vsel %vm1618_vm15, %v1700_v36, %v1699_v9  ;;  %v454_v9 = vor.u32 8388608, %v453_v38  ;;  %v2058_v31 = vadd.s32 4294967169, %v1035_v13 }
  0xca   :  { %v1704_v33 = vsel %vm1617_vm1, %v2639_v11, %v1701_v29  ;;  %v243_v11 = vstv %s242_s29  ;;  %v456_v36 = vadd.s32 1, %v2034_v50  ;;  %v649_v29 = vor.u32 8388608, %v648_v37  ;;  %s2087_s29 = sld [smem:[#allocation4 + $0x8]] }
  0xcb   :  { %2168 = vcosq.f32 %v1704_v33  ;;  %v2852_v22 = vadd.s32 1, %v2058_v31 }
  0xcc   :  { %2170 = vsinq.f32 %v1704_v33  ;;  %v651_v33 = vadd.s32 1, %v2042_v23  ;;  %vm457_vm6 = vcmp.gt.s32.totalorder %v456_v36, 0 }
  0xcd   :  { %v458_v16 = vsel %vm457_vm6, %v456_v36, 0  ;;  %vm1042_vm12 = vcmp.gt.s32.totalorder %v2852_v22, 0 }
  0xce   :  { %vm652_vm7 = vcmp.gt.s32.totalorder %v651_v33, 0 }
  0xd5   :  { %v2169_v39 = vpop.eup %2168 }
  0xd6   :  { %v2171_v41 = vpop.eup %2170  ;;  %v1716_v43 = vxor.u32 2147483648, %v2169_v39 }
  0xd7   :  { %v1713_v45 = vxor.u32 2147483648, %v2171_v41 }
  0xd8   :  { %v1717_v47 = vsel %vm1715_vm2, %v1716_v43, %v2171_v41  ;;  %v459_v41 = vshrl.u32 %v458_v16, 5  ;;  %v460_v43 = vand.u32 31, %v458_v16 }
  0xd9   :  { %v1714_v49 = vsel %vm1712_vm3, %v2169_v39, %v1713_v45  ;;  %v2842_v39 = vmul.f32 %v2820_v8, %v1419_v24  ;;  %v2844_v45 = vshll.u32 %v454_v9, 8  ;;  %vm448_vm3 = vcmp.lt.s32.totalorder %v2823_v2, 0 }
  0xda   :  { %v1718_v57 = vsel %vm1711_vm4, %v1714_v49, %v1717_v47  ;;  %v653_v47 = vsel %vm652_vm7, %v651_v33, 0  ;;  %v461_v53 = vsub.s32 32, %v460_v43  ;;  %v463_v58 = vshll.u32 %v2283_v40, %v460_v43 }
  0xdb   :  { %v1719_v28 = vsel %vm1708_vm5, nan, %v1718_v57  ;;  %v655_v49 = vand.u32 31, %v653_v47  ;;  %v2846_v57 = vshll.u32 %v649_v29, 8  ;;  %vm478_vm8 = vcmp.lt.s32.totalorder %v459_v41, 1 }
  0xdc   :  { %1722 = vperm.xlu0 %2150, %v1719_v28   ;;  %v2850_v28 = vand.u32 8388607, %v1031_v32  ;;  %v464_v34 = vshrl.u32 %v2284_v42, %v461_v53  ;;  %v473_v26 = vshrl.u32 %v2287_v48, %v461_v53  ;;  %vm479_vm9 = vcmp.lt.s32.totalorder %v459_v41, 2 }
  0xdd   :  { %vm481_vm10 = vcmp.lt.s32.totalorder %v459_v41, 4  ;;  %v656_v21 = vsub.s32 32, %v655_v49  ;;  %vm480_vm11 = vcmp.lt.s32.totalorder %v459_v41, 3  ;;  %v658_v17 = vshll.u32 %v2283_v40, %v655_v49 }
  0xde   :  { %v661_v23 = vshll.u32 %v2284_v42, %v655_v49  ;;  %v667_v41 = vshll.u32 %v2286_v46, %v655_v49  ;;  %vm2937_vm5 = vcmp.le.f32.partialorder %v446_v15, 0.7853982 }
  0xdf   :  { %v657_v36 = vshrl.u32 %v2283_v40, %v656_v21  ;;  %v659_v24 = vshrl.u32 %v2284_v42, %v656_v21  ;;  %v662_v16 = vshrl.u32 %v2285_v44, %v656_v21 }
 0x104   :  { %v231_v35 = vpop.f32.mrb[0].mxu0 }
 0x105   :  { %v233_v62 = vpop.f32.mrb[1].mxu0 }
 0x106   :  { %v159_v59 = vpop.permute.xlu0 %158 }
 0x107   :  { %v232_v61 = vadd.f32 %v231_v35, %v159_v59  ;;  %v234_v63 = vadd.f32 %v233_v62, %v159_v59  ;;  %v466_v59 = vshll.u32 %v2284_v42, %v460_v43  ;;  %v469_v35 = vshll.u32 %v2285_v44, %v460_v43 }
 0x108   :  { %v475_v62 = vshll.u32 %v2287_v48, %v460_v43 }
 0x109   :  { %v236_v25 = vadd.f32 %v232_v61, %v2791_v7  ;;  %v237_v10 = vadd.f32 %v234_v63, %v2793_v60  ;;  %v472_v61 = vshll.u32 %v2286_v46, %v460_v43  ;;  %v2859_v63 = vshrl.u32 %v653_v47, 5 }
 0x10b   :  { %v244_v3 = vmul.f32 %v243_v11, %v236_v25  ;;  %v245_v5 = vmul.f32 %v243_v11, %v237_v10  ;;  %v462_v11 = vshrl.u32 %v2283_v40, %v461_v53  ;;  %v470_v25 = vshrl.u32 %v2286_v46, %v461_v53 }
 0x10c   :  { %v465_v10 = vor.u32 %v464_v34, %v463_v58  ;;  %v474_v6 = vor.u32 %v473_v26, %v472_v61  ;;  %v664_v61 = vshll.u32 %v2285_v44, %v655_v49  ;;  %v670_v34 = vshll.u32 %v2287_v48, %v655_v49 }
 0x10d   :  { %v2803_v55 = vadd.f32 %v244_v3, %v240_v1  ;;  %v2805_v27 = vadd.f32 %v245_v5, %v241_v4  ;;  %v467_v1 = vshrl.u32 %v2285_v44, %v461_v53  ;;  %v476_v4 = vshrl.u32 %v2288_v56, %v461_v53 }
 0x10e   :  { %v471_v5 = vor.u32 %v470_v25, %v469_v35  ;;  %v482_v19 = vsel %vm478_vm8, %v462_v11, %v465_v10  ;;  %v487_v54 = vsel %vm481_vm10, %v474_v6, 920167782  ;;  %v663_v35 = vor.u32 %v662_v16, %v661_v23 }
 0x10f   :  { %360 = vmatprep.subr.mxu1 %v2805_v27  ;;  %v468_v3 = vor.u32 %v467_v1, %v466_v59  ;;  %v477_v14 = vor.u32 %v476_v4, %v475_v62  ;;  %v660_v59 = vor.u32 %v659_v24, %v658_v17  ;;  %v665_v62 = vshrl.u32 %v2286_v46, %v656_v21 }
 0x110   :  { %361 = vmatpush1.msra.mxu1 %v2803_v55  ;;  %v483_v52 = vsel %vm481_vm10, %v471_v5, 2102212464  ;;  %v488_v13 = vsel %vm480_vm11, %v471_v5, %v487_v54  ;;  %v668_v11 = vshrl.u32 %v2287_v48, %v656_v21  ;;  %v671_v1 = vshrl.u32 %v2288_v56, %v656_v21 }
 0x111   :  { %2030 = vmatmul.mubr.msk.f32.vlgmr.msra.gmra.mrb[0].mxu1 %vm161_vm0, %v2812_v30  ;;  %v486_v38 = vsel %vm478_vm8, %v465_v10, %v468_v3  ;;  %v490_v20 = vsel %vm478_vm8, %v468_v3, %v471_v5  ;;  %v484_v37 = vsel %vm480_vm11, %v468_v3, %v483_v52  ;;  %v491_v50 = vsel %vm481_vm10, %v477_v14, 1326507024 }
 0x112   :  { %814 = vmatprep.mubr.f32.mxu1 %v2281_v0  ;;  %v492_v9 = vsel %vm480_vm11, %v474_v6, %v491_v50  ;;  %v485_v29 = vsel %vm479_vm9, %v482_v19, %v484_v37  ;;  %v489_v33 = vsel %vm479_vm9, %v486_v38, %v488_v13  ;;  %v666_v26 = vor.u32 %v665_v62, %v664_v61 }
 0x113   :  { %v493_v31 = vsel %vm479_vm9, %v490_v20, %v492_v9  ;;  %v2884_v53 = vmul.u32.u64.low %v2844_v45, %v489_v33  ;;  %v2885_v58 = vmul.u32.u64.high %v2844_v45, %v489_v33, %v2884_v53  ;;  %v501_v25 = vmul.u32 %v2844_v45, %v485_v29 }
 0x114   :  { %v2880_v43 = vmul.u32.u64.low %v2844_v45, %v493_v31  ;;  %v2881_v47 = vmul.u32.u64.high %v2844_v45, %v493_v31, %v2880_v43  ;;  %vm673_vm13 = vcmp.lt.s32.totalorder %v2859_v63, 1  ;;  %vm674_vm14 = vcmp.lt.s32.totalorder %v2859_v63, 2 }
 0x115   :  { %v504_v4 = vadd.s32 1, %v2885_v58  ;;  %v669_v10 = vor.u32 %v668_v11, %v667_v41  ;;  %vm675_vm1 = vcmp.lt.s32.totalorder %v2859_v63, 3  ;;  %v672_v3 = vor.u32 %v671_v1, %v670_v34 }
 0x116   :  { %vm503_vm15 = vc.u32 %v2881_v47, %v2884_v53  ;;  %vm676_vm2 = vcmp.lt.s32.totalorder %v2859_v63, 4  ;;  %v677_v49 = vsel %vm673_vm13, %v657_v36, %v660_v59  ;;  %v681_v5 = vsel %vm673_vm13, %v660_v59, %v663_v35 }
 0x117   :  { %v505_v45 = vsel %vm503_vm15, %v504_v4, %v2885_v58  ;;  %v678_v21 = vsel %vm676_vm2, %v666_v26, 2102212464  ;;  %v682_v6 = vsel %vm676_vm2, %v669_v10, 920167782  ;;  %v685_v14 = vsel %vm673_vm13, %v663_v35, %v666_v26 }
 0x118   :  { %v506_v17 = vadd.s32 %v505_v45, %v501_v25  ;;  %v679_v19 = vsel %vm675_vm1, %v663_v35, %v678_v21  ;;  %v683_v52 = vsel %vm675_vm1, %v666_v26, %v682_v6  ;;  %v686_v38 = vsel %vm676_vm2, %v672_v3, 1326507024 }
 0x119   :  { %v680_v20 = vsel %vm674_vm14, %v677_v49, %v679_v19  ;;  %v684_v37 = vsel %vm674_vm14, %v681_v5, %v683_v52  ;;  %v687_v54 = vsel %vm675_vm1, %v669_v10, %v686_v38  ;;  %v1043_v50 = vsel %vm1042_vm12, %v2852_v22, 0 }
 0x11a   :  { %v507_v23 = vadd.s32 536870912, %v506_v17  ;;  %v688_v13 = vsel %vm674_vm14, %v685_v14, %v687_v54  ;;  %v2913_v9 = vmul.u32.u64.low %v2846_v57, %v684_v37  ;;  %v2914_v36 = vmul.u32.u64.high %v2846_v57, %v684_v37, %v2913_v9 }
 0x11b   :  { %v2918_v24 = vmul.u32.u64.low %v2846_v57, %v688_v13  ;;  %v2919_v29 = vmul.u32.u64.high %v2846_v57, %v688_v13, %v2918_v24  ;;  %v1039_v33 = vor.u32 8388608, %v2850_v28  ;;  %v1421_v31 = vand.u32 2147483647, %v2842_v39 }
 0x11c   :  { %v508_v16 = vshrl.u32 %v507_v23, 30  ;;  %v1045_v43 = vand.u32 31, %v1043_v50  ;;  %v696_v22 = vmul.u32 %v2846_v57, %v680_v20  ;;  %v699_v58 = vadd.s32 1, %v2914_v36 }
 0x11d   :  { %vm698_vm4 = vc.u32 %v2919_v29, %v2913_v9  ;;  %v2928_v35 = vshll.u32 %v1039_v33, 8  ;;  %v1424_v61 = vand.u32 2139095040, %v2842_v39  ;;  %v2933_v28 = vand.u32 8388607, %v1421_v31 }
 0x11e   :  { %v509_v63 = vshll.u32 %v508_v16, 30  ;;  %v1046_v59 = vsub.s32 32, %v1045_v43  ;;  %v532_v41 = vsub.s32 4, %v508_v16  ;;  %v700_v11 = vsel %vm698_vm4, %v699_v58, %v2914_v36 }
 0x11f   :  { %v1044_v34 = vshrl.u32 %v1043_v50, 5  ;;  %v701_v1 = vadd.s32 %v700_v11, %v696_v22  ;;  %v1048_v25 = vshll.u32 %v2283_v40, %v1045_v43  ;;  %v1051_v4 = vshll.u32 %v2284_v42, %v1045_v43 }
 0x120   :  { %v2941_v62 = vsub.s32 %v506_v17, %v509_v63  ;;  %v1049_v26 = vshrl.u32 %v2284_v42, %v1046_v59  ;;  %v1052_v15 = vshrl.u32 %v2285_v44, %v1046_v59  ;;  %v1054_v3 = vshll.u32 %v2285_v44, %v1045_v43 }
 0x121   :  { %v1055_v49 = vshrl.u32 %v2286_v46, %v1046_v59  ;;  %v502_v5 = vadd.s32 %v2884_v53, %v2881_v47  ;;  %v702_v45 = vadd.s32 536870912, %v701_v1  ;;  %v1057_v21 = vshll.u32 %v2286_v46, %v1045_v43 }
 0x122   :  { %v512_v10 = vsub.s32 0, %v2941_v62  ;;  %v1425_v6 = vshrl.u32 %v1424_v61, 23  ;;  %v533_v17 = vsel %vm448_vm3, %v532_v41, %v508_v16  ;;  %v1058_v19 = vshrl.u32 %v2287_v48, %v1046_v59 }
 0x123   :  { %vm1066_vm6 = vcmp.lt.s32.totalorder %v1044_v34, 4  ;;  %v2958_v52 = vshrl.u32 %v702_v45, 30  ;;  %v1047_v38 = vshrl.u32 %v2283_v40, %v1046_v59  ;;  %v1060_v20 = vshll.u32 %v2287_v48, %v1045_v43 }
 0x124   :  { %v2035_v14 = vmin.u32 %v512_v10, %v2941_v62  ;;  %v1061_v47 = vshrl.u32 %v2288_v56, %v1046_v59  ;;  %v1050_v37 = vor.u32 %v1049_v26, %v1048_v25  ;;  %v1053_v54 = vor.u32 %v1052_v15, %v1051_v4 }
 0x125   :  { %v1056_v50 = vor.u32 %v1055_v49, %v1054_v3  ;;  %v704_v23 = vshll.u32 %v2958_v52, 30  ;;  %v1059_v13 = vor.u32 %v1058_v19, %v1057_v21  ;;  %vm1063_vm7 = vcmp.lt.s32.totalorder %v1044_v34, 1 }
 0x126   :  { %v514_v53 = vclz %v2035_v14  ;;  %vm1065_vm8 = vcmp.lt.s32.totalorder %v1044_v34, 3  ;;  %v1062_v24 = vor.u32 %v1061_v47, %v1060_v20  ;;  %v2074_v16 = vadd.s32 4294967169, %v1425_v6 }
 0x127   :  { %v1068_v33 = vsel %vm1066_vm6, %v1056_v50, 2102212464  ;;  %v535_v22 = vsel %vm2937_vm5, 0, %v533_v17  ;;  %v2967_v43 = vsub.s32 %v701_v1, %v704_v23  ;;  %vm1064_vm9 = vcmp.lt.s32.totalorder %v1044_v34, 2 }
 0x128   :  { %v2036_v36 = vadd.s32 4294967294, %v514_v53  ;;  %v1072_v63 = vsel %vm1066_vm6, %v1059_v13, 920167782  ;;  %v1067_v58 = vsel %vm1063_vm7, %v1047_v38, %v1050_v37  ;;  %v1071_v59 = vsel %vm1063_vm7, %v1050_v37, %v1053_v54 }
 0x129   :  { %v1073_v61 = vsel %vm1065_vm8, %v1056_v50, %v1072_v63  ;;  %v707_v11 = vsub.s32 0, %v2967_v43  ;;  %v1069_v25 = vsel %vm1065_vm8, %v1053_v54, %v1068_v33  ;;  %v1075_v26 = vsel %vm1063_vm7, %v1053_v54, %v1056_v50 }
 0x12a   :  { %vm2037_vm10 = vcmp.lt.s32.totalorder %v2036_v36, 0  ;;  %v1076_v15 = vsel %vm1066_vm6, %v1062_v24, 1326507024  ;;  %vm643_vm11 = vcmp.lt.s32.totalorder %v2826_v12, 0  ;;  %v1074_v49 = vsel %vm1064_vm9, %v1071_v59, %v1073_v61 }
 0x12b   :  { %v517_v41 = vsel %vm2037_vm10, 0, %v2036_v36  ;;  %v2043_v3 = vmin.u32 %v707_v11, %v2967_v43  ;;  %v1077_v45 = vsel %vm1065_vm8, %v1059_v13, %v1076_v15  ;;  %v1431_v17 = vadd.s32 1, %v2074_v16 }
 0x12c   :  { %v518_v4 = vsub.s32 32, %v517_v41  ;;  %v519_v1 = vshll.u32 %v2941_v62, %v517_v41  ;;  %v522_v10 = vsub.s32 4294967266, %v517_v41  ;;  %v1078_v14 = vsel %vm1064_vm9, %v1075_v26, %v1077_v45 }
 0x12d   :  { %v539_v19 = vadd.s32 3, %v535_v22  ;;  %v709_v38 = vclz %v2043_v3  ;;  %v1070_v62 = vsel %vm1064_vm9, %v1067_v58, %v1069_v25  ;;  %v1429_v20 = vor.u32 8388608, %v2933_v28 }
 0x12e   :  { %v520_v21 = vshrl.u32 %v502_v5, %v518_v4  ;;  %v523_v6 = vadd.s32 127, %v522_v10  ;;  %v2986_v37 = vmul.u32.u64.low %v2928_v35, %v1078_v14  ;;  %v2987_v54 = vmul.u32.u64.high %v2928_v35, %v1078_v14, %v2986_v37 }
 0x12f   :  { %v2044_v50 = vadd.s32 4294967294, %v709_v38  ;;  %v2990_v23 = vmul.u32.u64.low %v2928_v35, %v1074_v49  ;;  %v2991_v5 = vmul.u32.u64.high %v2928_v35, %v1074_v49, %v2990_v23  ;;  %vm1432_vm12 = vcmp.gt.s32.totalorder %v1431_v17, 0 }
 0x130   :  { %v521_v47 = vor.u32 %v520_v21, %v519_v1  ;;  %v524_v53 = vshll.u32 %v523_v6, 23  ;;  %v727_v34 = vsub.s32 4, %v2958_v52  ;;  %v1433_v24 = vsel %vm1432_vm12, %v1431_v17, 0 }
 0x131   :  { %v2995_v33 = vand.u32 3, %v539_v19  ;;  %v697_v16 = vadd.s32 %v2913_v9, %v2919_v29  ;;  %vm2045_vm13 = vcmp.lt.s32.totalorder %v2044_v50, 0  ;;  %v1435_v22 = vand.u32 31, %v1433_v24 }
 0x132   :  { %v525_v13 = vor.u32 4788187, %v524_v53  ;;  %v528_v36 = vcvt.s32.f32 %v521_v47  ;;  %v712_v58 = vsel %vm2045_vm13, 0, %v2044_v50  ;;  %v1086_v59 = vmul.u32 %v2928_v35, %v1070_v62 }
 0x133   :  { %vm1088_vm14 = vc.u32 %v2987_v54, %v2990_v23  ;;  %vm3004_vm15 = vcmp.le.f32.partialorder %v641_v18, 0.7853982  ;;  %v713_v41 = vsub.s32 32, %v712_v58  ;;  %v714_v11 = vshll.u32 %v2967_v43, %v712_v58 }
 0x134   :  { %v526_v63 = vand.u32 2147483647, %v525_v13  ;;  %v717_v25 = vsub.s32 4294967266, %v712_v58  ;;  %v1089_v9 = vadd.s32 1, %v2991_v5  ;;  %v728_v35 = vsel %vm643_vm11, %v727_v34, %v2958_v52 }
 0x135   :  { %v3013_v26 = vshrl.u32 %v1433_v24, 5  ;;  %v1436_v4 = vsub.s32 32, %v1435_v22  ;;  %v715_v1 = vshrl.u32 %v697_v16, %v713_v41  ;;  %v1438_v15 = vshll.u32 %v2283_v40, %v1435_v22 }
 0x136   :  { %v529_v29 = vmul.f32 %v528_v36, %v526_v63  ;;  %v718_v10 = vadd.s32 127, %v717_v25  ;;  %v1090_v18 = vsel %vm1088_vm14, %v1089_v9, %v2991_v5  ;;  %v1441_v45 = vshll.u32 %v2284_v42, %v1435_v22 }
 0x137   :  { %v1091_v49 = vadd.s32 %v1090_v18, %v1086_v59  ;;  %v1439_v43 = vshrl.u32 %v2284_v42, %v1436_v4  ;;  %v716_v21 = vor.u32 %v715_v1, %v714_v11  ;;  %v1442_v14 = vshrl.u32 %v2285_v44, %v1436_v4 }
 0x138   :  { %v530_v3 = vxor.u32 2147483648, %v529_v29  ;;  %v719_v6 = vshll.u32 %v718_v10, 23  ;;  %v1444_v52 = vshll.u32 %v2285_v44, %v1435_v22  ;;  %v1445_v38 = vshrl.u32 %v2286_v46, %v1436_v4 }
 0x139   :  { %v1092_v19 = vadd.s32 536870912, %v1091_v49  ;;  %v1447_v62 = vshll.u32 %v2286_v46, %v1435_v22  ;;  %v723_v37 = vcvt.s32.f32 %v716_v21  ;;  %v1440_v50 = vor.u32 %v1439_v43, %v1438_v15 }
 0x13a   :  { %v531_v17 = vsel %vm448_vm3, %v530_v3, %v529_v29  ;;  %v720_v53 = vor.u32 4788187, %v719_v6  ;;  %v1443_v13 = vor.u32 %v1442_v14, %v1441_v45  ;;  %v1448_v36 = vshrl.u32 %v2287_v48, %v1436_v4 }
 0x13b   :  { %v534_v47 = vsel %vm2937_vm5, %v2823_v2, %v531_v17  ;;  %v3028_v5 = vshrl.u32 %v1092_v19, 30  ;;  %v1450_v24 = vshll.u32 %v2287_v48, %v1435_v22  ;;  %v1451_v16 = vshrl.u32 %v2288_v56, %v1436_v4 }
 0x13c   :  { %2172 = vcosq.f32 %v534_v47  ;;  %v721_v34 = vand.u32 2147483647, %v720_v53  ;;  %v730_v63 = vsel %vm3004_vm15, 0, %v728_v35  ;;  %v1449_v58 = vor.u32 %v1448_v36, %v1447_v62 }
 0x13d   :  { %2174 = vsinq.f32 %v534_v47  ;;  %v1094_v57 = vshll.u32 %v3028_v5, 30  ;;  %vm1453_vm1 = vcmp.lt.s32.totalorder %v3013_v26, 1  ;;  %v1437_v41 = vshrl.u32 %v2283_v40, %v1436_v4 }
 0x13e   :  { %v724_v59 = vmul.f32 %v723_v37, %v721_v34  ;;  %v1446_v11 = vor.u32 %v1445_v38, %v1444_v52  ;;  %v3040_v25 = vshll.u32 %v1429_v20, 8  ;;  %v1452_v22 = vor.u32 %v1451_v16, %v1450_v24 }
 0x13f   :  { %v3042_v9 = vsub.s32 %v1091_v49, %v1094_v57  ;;  %vm1455_vm2 = vcmp.lt.s32.totalorder %v3013_v26, 3  ;;  %vm1456_vm3 = vcmp.lt.s32.totalorder %v3013_v26, 4  ;;  %vm538_vm4 = vweird.f32 %v2823_v2 }
 0x140   :  { %v725_v29 = vxor.u32 2147483648, %v724_v59  ;;  %vm1454_vm5 = vcmp.lt.s32.totalorder %v3013_v26, 2  ;;  %v1458_v35 = vsel %vm1456_vm3, %v1446_v11, 2102212464  ;;  %v1461_v28 = vsel %vm1453_vm1, %v1440_v50, %v1443_v13 }
 0x141   :  { %vm541_vm6 = vcmp.lt.s32.totalorder %v2995_v33, 2  ;;  %v734_v20 = vadd.s32 3, %v730_v63  ;;  %v1097_v4 = vsub.s32 0, %v3042_v9  ;;  %v1462_v1 = vsel %vm1456_vm3, %v1449_v58, 920167782 }
 0x142   :  { %v726_v10 = vsel %vm643_vm11, %v725_v29, %v724_v59  ;;  %v1457_v18 = vsel %vm1453_vm1, %v1437_v41, %v1440_v50  ;;  %v1459_v15 = vsel %vm1455_vm2, %v1443_v13, %v1458_v35  ;;  %v1463_v3 = vsel %vm1455_vm2, %v1446_v11, %v1462_v1 }
 0x143   :  { %v729_v49 = vsel %vm3004_vm15, %v2826_v12, %v726_v10  ;;  %v2059_v43 = vmin.u32 %v1097_v4, %v3042_v9  ;;  %v1464_v45 = vsel %vm1454_vm5, %v1461_v28, %v1463_v3  ;;  %v1465_v21 = vsel %vm1453_vm1, %v1443_v13, %v1446_v11 }
 0x144   :  { %2176 = vcosq.f32 %v729_v49  ;;  %v1466_v6 = vsel %vm1456_vm3, %v1452_v22, 1326507024  ;;  %v3077_v14 = vmul.u32.u64.low %v3040_v25, %v1464_v45  ;;  %v3078_v52 = vmul.u32.u64.high %v3040_v25, %v1464_v45, %v3077_v14 }
 0x145   :  { %vm542_vm7 = vcmp.eq.s32.totalorder %v2995_v33, 0  ;;  %vm545_vm8 = vcmp.eq.s32.totalorder %v2995_v33, 2  ;;  %2178 = vsinq.f32 %v729_v49  ;;  %v1099_v17 = vclz %v2059_v43 }
 0x146   :  { %v2173_v61 = vpop.eup %2172  ;;  %v735_v62 = vand.u32 3, %v734_v20  ;;  %v1460_v47 = vsel %vm1454_vm5, %v1457_v18, %v1459_v15  ;;  %v1467_v53 = vsel %vm1455_vm2, %v1449_v58, %v1466_v6  ;;  %v1809_v36 = vstv %s3046_s6 }
 0x147   :  { %v2175_v19 = vpop.eup %2174  ;;  %v546_v38 = vxor.u32 2147483648, %v2173_v61  ;;  %v2060_v50 = vadd.s32 4294967294, %v1099_v17  ;;  %v1468_v13 = vsel %vm1454_vm5, %v1465_v21, %v1467_v53  ;;  %v1087_v24 = vadd.s32 %v2990_v23, %v2987_v54 }
 0x148   :  { %v543_v37 = vxor.u32 2147483648, %v2175_v19  ;;  %v3093_v16 = vmul.u32.u64.low %v3040_v25, %v1468_v13  ;;  %v3094_v63 = vmul.u32.u64.high %v3040_v25, %v1468_v13, %v3093_v16  ;;  %v1479_v58 = vadd.s32 1, %v3078_v52 }
 0x149   :  { %v547_v34 = vsel %vm545_vm8, %v546_v38, %v2175_v19  ;;  %vm2061_vm9 = vcmp.lt.s32.totalorder %v2060_v50, 0  ;;  %v3100_v59 = vmul.f32 %v2820_v8, %v1809_v36  ;;  %v1117_v11 = vsub.s32 4, %v3028_v5 }
 0x14a   :  { %v544_v57 = vsel %vm542_vm7, %v2173_v61, %v543_v37  ;;  %v1102_v41 = vsel %vm2061_vm9, 0, %v2060_v50  ;;  %v1476_v54 = vmul.u32 %v3040_v25, %v1460_v47  ;;  %vm733_vm10 = vweird.f32 %v2826_v12 }
 0x14b   :  { %v548_v26 = vsel %vm541_vm6, %v544_v57, %v547_v34  ;;  %v1103_v22 = vsub.s32 32, %v1102_v41  ;;  %v1104_v29 = vshll.u32 %v3042_v9, %v1102_v41  ;;  %v1107_v35 = vsub.s32 4294967266, %v1102_v41 }
 0x14c   :  { %v549_v23 = vsel %vm538_vm4, nan, %v548_v26  ;;  %vm3114_vm11 = vcmp.le.f32.partialorder %v1031_v32, 0.7853982  ;;  %vm1033_vm12 = vcmp.lt.s32.totalorder %v2829_v51, 0  ;;  %vm1478_vm13 = vc.u32 %v3094_v63, %v3077_v14 }
 0x14d   :  { %552 = vperm.xlu1 %2151, %v549_v23   ;;  %v1105_v2 = vshrl.u32 %v1087_v24, %v1103_v22  ;;  %v1108_v33 = vadd.s32 127, %v1107_v35  ;;  %v1480_v25 = vsel %vm1478_vm13, %v1479_v58, %v3078_v52  ;;  %v1814_v9 = vand.u32 2139095040, %v3100_v59 }
 0x14e   :  { %v2177_v28 = vpop.eup %2176  ;;  %vm737_vm14 = vcmp.eq.s32.totalorder %v735_v62, 0  ;;  %vm740_vm15 = vcmp.eq.s32.totalorder %v735_v62, 2  ;;  %v1118_v32 = vsel %vm1033_vm12, %v1117_v11, %v3028_v5  ;;  %v1481_v20 = vadd.s32 %v1480_v25, %v1476_v54 }
 0x14f   :  { %v2179_v4 = vpop.eup %2178  ;;  %v741_v1 = vxor.u32 2147483648, %v2177_v28  ;;  %v1106_v10 = vor.u32 %v1105_v2, %v1104_v29  ;;  %v1109_v18 = vshll.u32 %v1108_v33, 23  ;;  %v1815_v15 = vshrl.u32 %v1814_v9, 23 }
 0x150   :  { %vm736_vm1 = vcmp.lt.s32.totalorder %v735_v62, 2  ;;  %v738_v3 = vxor.u32 2147483648, %v2179_v4  ;;  %v1482_v49 = vadd.s32 536870912, %v1481_v20  ;;  %v1811_v43 = vand.u32 2147483647, %v3100_v59 }
 0x151   :  { %v742_v45 = vsel %vm740_vm15, %v741_v1, %v2179_v4  ;;  %v1110_v21 = vor.u32 4788187, %v1109_v18  ;;  %v1113_v6 = vcvt.s32.f32 %v1106_v10  ;;  %v2090_v52 = vadd.s32 4294967169, %v1815_v15 }
 0x152   :  { %v739_v61 = vsel %vm737_vm14, %v2177_v28, %v738_v3  ;;  %v1120_v5 = vsel %vm3114_vm11, 0, %v1118_v32  ;;  %v3130_v17 = vshrl.u32 %v1482_v49, 30  ;;  %v434_v53 = vstv %s3109_s16 }
 0x153   :  { %v743_v19 = vsel %vm736_vm1, %v739_v61, %v742_v45  ;;  %v1111_v38 = vand.u32 2147483647, %v1110_v21  ;;  %v1821_v47 = vadd.s32 1, %v2090_v52  ;;  %v1124_v62 = vadd.s32 3, %v1120_v5 }
 0x154   :  { %v744_v37 = vsel %vm733_vm10, nan, %v743_v19  ;;  %v1484_v50 = vshll.u32 %v3130_v17, 30  ;;  %v1818_v36 = vand.u32 8388607, %v1811_v43  ;;  %v3143_v58 = vmul.f32 %v434_v53, %v2805_v27 }
 0x155   :  { %747 = vperm.xlu1 %2151, %v744_v37   ;;  %v1114_v13 = vmul.f32 %v1113_v6, %v1111_v38  ;;  %vm1822_vm2 = vcmp.gt.s32.totalorder %v1821_v47, 0  ;;  %v3146_v12 = vmul.f32 %v434_v53, %v2803_v55  ;;  %v3151_v11 = vand.u32 3, %v1124_v62  ;;  %v358_v53 = vpop.permute.xlu0 %357 }
 0x156   :  { %v3140_v34 = vsub.s32 %v1481_v20, %v1484_v50  ;;  %v1823_v24 = vsel %vm1822_vm2, %v1821_v47, 0  ;;  %v1819_v54 = vor.u32 8388608, %v1818_v36  ;;  %v438_v25 = vstv %s3133_s17 }
 0x157   :  { %v1115_v16 = vxor.u32 2147483648, %v1114_v13  ;;  %v1825_v57 = vand.u32 31, %v1823_v24  ;;  %v3163_v28 = vshrl.u32 %v1823_v24, 5  ;;  %vm1130_vm3 = vcmp.eq.s32.totalorder %v3151_v11, 2 }
 0x158   :  { %v1487_v26 = vsub.s32 0, %v3140_v34  ;;  %v1477_v8 = vadd.s32 %v3077_v14, %v3094_v63  ;;  %v3169_v20 = vshll.u32 %v1819_v54, 8  ;;  %vm1127_vm4 = vcmp.eq.s32.totalorder %v3151_v11, 0 }
 0x159   :  { %v1116_v41 = vsel %vm1033_vm12, %v1115_v16, %v1114_v13  ;;  %v1826_v23 = vsub.s32 32, %v1825_v57  ;;  %v1828_v27 = vshll.u32 %v2283_v40, %v1825_v57  ;;  %v1831_v55 = vshll.u32 %v2284_v42, %v1825_v57 }
 0x15a   :  { %v1119_v22 = vsel %vm3114_vm11, %v2829_v51, %v1116_v41  ;;  %v2075_v29 = vmin.u32 %v1487_v26, %v3140_v34  ;;  %v1834_v33 = vshll.u32 %v2285_v44, %v1825_v57  ;;  %v1837_v4 = vshll.u32 %v2286_v46, %v1825_v57 }
 0x15b   :  { %2180 = vcosq.f32 %v1119_v22  ;;  %v1829_v35 = vshrl.u32 %v2284_v42, %v1826_v23  ;;  %v1832_v2 = vshrl.u32 %v2285_v44, %v1826_v23  ;;  %v1835_v32 = vshrl.u32 %v2286_v46, %v1826_v23 }
 0x15c   :  { %2182 = vsinq.f32 %v1119_v22  ;;  %v1489_v9 = vclz %v2075_v29  ;;  %v1838_v44 = vshrl.u32 %v2287_v48, %v1826_v23  ;;  %v1840_v1 = vshll.u32 %v2287_v48, %v1825_v57 }
 0x15d   :  { %vm1126_vm5 = vcmp.lt.s32.totalorder %v3151_v11, 2  ;;  %v1830_v10 = vor.u32 %v1829_v35, %v1828_v27  ;;  %v1833_v18 = vor.u32 %v1832_v2, %v1831_v55  ;;  %v1836_v15 = vor.u32 %v1835_v32, %v1834_v33 }
 0x15e   :  { %v2076_v42 = vadd.s32 4294967294, %v1489_v9  ;;  %v1841_v14 = vshrl.u32 %v2288_v56, %v1826_v23  ;;  %vm1123_vm6 = vweird.f32 %v2829_v51  ;;  %v1839_v63 = vor.u32 %v1838_v44, %v1837_v4 }
 0x15f   :  { %vm1843_vm8 = vcmp.lt.s32.totalorder %v3163_v28, 1  ;;  %vm1846_vm9 = vcmp.lt.s32.totalorder %v3163_v28, 4  ;;  %v1827_v3 = vshrl.u32 %v2283_v40, %v1826_v23  ;;  %vm1845_vm10 = vcmp.lt.s32.totalorder %v3163_v28, 3 }
 0x160   :  { %vm2077_vm7 = vcmp.lt.s32.totalorder %v2076_v42, 0  ;;  %v1842_v49 = vor.u32 %v1841_v14, %v1840_v1  ;;  %v1848_v56 = vsel %vm1846_vm9, %v1836_v15, 2102212464  ;;  %vm1844_vm11 = vcmp.lt.s32.totalorder %v3163_v28, 2 }
 0x161   :  { %v1492_v46 = vsel %vm2077_vm7, 0, %v2076_v42  ;;  %v1851_v6 = vsel %vm1843_vm8, %v1830_v10, %v1833_v18  ;;  %v1852_v52 = vsel %vm1846_vm9, %v1839_v63, 920167782  ;;  %v1855_v40 = vsel %vm1843_vm8, %v1833_v18, %v1836_v15 }
 0x162   :  { %v1493_v48 = vsub.s32 32, %v1492_v46  ;;  %v1494_v45 = vshll.u32 %v3140_v34, %v1492_v46  ;;  %v1497_v21 = vsub.s32 4294967266, %v1492_v46  ;;  %v1853_v19 = vsel %vm1845_vm10, %v1836_v15, %v1852_v52 }
 0x163   :  { %v1856_v38 = vsel %vm1846_vm9, %v1842_v49, 1326507024  ;;  %v1507_v50 = vsub.s32 4, %v3130_v17  ;;  %v1847_v13 = vsel %vm1843_vm8, %v1827_v3, %v1830_v10  ;;  %v1849_v62 = vsel %vm1845_vm10, %v1833_v18, %v1848_v56 }
 0x164   :  { %v1495_v61 = vshrl.u32 %v1477_v8, %v1493_v48  ;;  %v1498_v5 = vadd.s32 127, %v1497_v21  ;;  %v1857_v36 = vsel %vm1845_vm10, %v1839_v63, %v1856_v38  ;;  %v1854_v22 = vsel %vm1844_vm11, %v1851_v6, %v1853_v19 }
 0x165   :  { %v2181_v47 = vpop.eup %2180  ;;  %v1858_v29 = vsel %vm1844_vm11, %v1855_v40, %v1857_v36  ;;  %v1850_v1 = vsel %vm1844_vm11, %v1847_v13, %v1849_v62  ;;  %v3228_v15 = vmul.u32.u64.low %v3169_v20, %v1854_v22  ;;  %v3229_v14 = vmul.u32.u64.high %v3169_v20, %v1854_v22, %v3228_v15 }
 0x166   :  { %v2183_v34 = vpop.eup %2182  ;;  %v1131_v57 = vxor.u32 2147483648, %v2181_v47  ;;  %v1496_v26 = vor.u32 %v1495_v61, %v1494_v45  ;;  %v1499_v41 = vshll.u32 %v1498_v5, 23  ;;  %vm3239_vm12 = vcmp.le.f32.partialorder %v1421_v31, 0.7853982 }
 0x167   :  { %v1128_v23 = vxor.u32 2147483648, %v2183_v34  ;;  %v3214_v8 = vmul.u32.u64.low %v3169_v20, %v1858_v29  ;;  %v3215_v32 = vmul.u32.u64.high %v3169_v20, %v1858_v29, %v3214_v8  ;;  %vm1423_vm13 = vcmp.lt.s32.totalorder %v2842_v39, 0 }
 0x168   :  { %v1132_v55 = vsel %vm1130_vm3, %v1131_v57, %v2183_v34  ;;  %v1500_v35 = vor.u32 4788187, %v1499_v41  ;;  %v1503_v2 = vcvt.s32.f32 %v1496_v26  ;;  %v1866_v3 = vmul.u32 %v3169_v20, %v1850_v1 }
 0x169   :  { %v1129_v9 = vsel %vm1127_vm4, %v2181_v47, %v1128_v23  ;;  %vm1868_vm14 = vc.u32 %v3215_v32, %v3228_v15  ;;  %vm1513_vm3 = vweird.f32 %v2842_v39  ;;  %v1867_v36 = vadd.s32 %v3228_v15, %v3215_v32 }
 0x16a   :  { %v1133_v4 = vsel %vm1126_vm5, %v1129_v9, %v1132_v55  ;;  %v1501_v44 = vand.u32 2147483647, %v1500_v35  ;;  %vm1813_vm5 = vcmp.lt.s32.totalorder %v3100_v59, 0  ;;  %vm1903_vm10 = vweird.f32 %v3100_v59 }
 0x16b   :  { %v1134_v18 = vsel %vm1123_vm6, nan, %v1133_v4  ;;  %vm1812_vm6 = vcmp.le.f32.partialorder %v1811_v43, 0.7853982 }
 0x16c   :  { %1137 = vperm.xlu1 %2151, %v1134_v18   ;;  %v1504_v46 = vmul.f32 %v1503_v2, %v1501_v44 }
 0x16e   :  { %v1505_v51 = vxor.u32 2147483648, %v1504_v46 }
 0x1e4   :  { %v426_v37 = vpop.f32.mrb[0].mxu1 }
 0x1e5   :  { %v427_v24 = vadd.f32 %v426_v37, %v358_v53  ;;  %v428_v16 = vpop.f32.mrb[1].mxu1 }
 0x1e6   :  { %v429_v54 = vadd.f32 %v428_v16, %v358_v53 }
 0x1e7   :  { %v431_v27 = vadd.f32 %v427_v24, %v2791_v7 }
 0x1e8   :  { %v432_v33 = vadd.f32 %v429_v54, %v2793_v60 }
 0x1e9   :  { %v439_v42 = vmul.f32 %v438_v25, %v431_v27 }
 0x1ea   :  { %v440_v10 = vmul.f32 %v438_v25, %v432_v33  ;;  %v1508_v25 = vsel %vm1423_vm13, %v1507_v50, %v3130_v17 }
 0x1eb   :  { %v3232_v63 = vadd.f32 %v439_v42, %v3146_v12  ;;  %v1506_v12 = vsel %vm1423_vm13, %v1505_v51, %v1504_v46  ;;  %v1510_v17 = vsel %vm3239_vm12, 0, %v1508_v25  ;;  %v553_v46 = vpop.permute.xlu1 %552 }
 0x1ec   :  { %v3235_v11 = vadd.f32 %v440_v10, %v3143_v58  ;;  %v1869_v58 = vadd.s32 1, %v3229_v14  ;;  %v1509_v31 = vsel %vm3239_vm12, %v2842_v39, %v1506_v12  ;;  %v1514_v48 = vadd.s32 3, %v1510_v17 }
 0x1ed   :  { %2184 = vcosq.f32 %v1509_v31 }
 0x1ee   :  { %555 = vmatprep.subr.mxu0 %v3235_v11  ;;  %v1870_v20 = vsel %vm1868_vm14, %v1869_v58, %v3229_v14  ;;  %2186 = vsinq.f32 %v1509_v31  ;;  %v1515_v56 = vand.u32 3, %v1514_v48  ;;  %v633_v58 = vstv %s2040_s19 }
 0x1ef   :  { %556 = vmatpush1.msra.mxu0 %v3232_v63  ;;  %v1871_v49 = vadd.s32 %v1870_v20, %v1866_v3  ;;  %v629_v3 = vstv %s2039_s18 }
 0x1f0   :  { %2038 = vmatmul.mubr.msk.f32.vlgmr.msra.gmra.mrb[2].mxu0 %vm161_vm0, %v2812_v30  ;;  %vm1520_vm15 = vcmp.eq.s32.totalorder %v1515_v56, 2  ;;  %vm1517_vm1 = vcmp.eq.s32.totalorder %v1515_v56, 0  ;;  %vm1516_vm2 = vcmp.lt.s32.totalorder %v1515_v56, 2  ;;  %v631_v48 = vmul.f32 %v629_v3, %v3235_v11  ;;  %v3273_v56 = vld [vmem:[%s3322_s4] sm:$0xff]  ;;  %s2055_s4 = sld [smem:[#allocation4 + $0x4]] }
 0x1f1   :  { %1009 = vmatprep.mubr.f32.mxu0 %v2281_v0  ;;  %v1872_v45 = vadd.s32 536870912, %v1871_v49 }
 0x1f3   :  { %v1873_v21 = vshrl.u32 %v1872_v45, 30 }
 0x1f5   :  { %v1874_v6 = vshll.u32 %v1873_v21, 30  ;;  %v1897_v27 = vsub.s32 4, %v1873_v21 }
 0x1f7   :  { %v1875_v30 = vsub.s32 %v1871_v49, %v1874_v6  ;;  %v2185_v52 = vpop.eup %2184  ;;  %v1898_v2 = vsel %vm1813_vm5, %v1897_v27, %v1873_v21 }
 0x1f8   :  { %v2187_v61 = vpop.eup %2186  ;;  %v1521_v5 = vxor.u32 2147483648, %v2185_v52  ;;  %v1900_v8 = vsel %vm1812_vm6, 0, %v1898_v2 }
 0x1f9   :  { %v1877_v40 = vsub.s32 0, %v1875_v30  ;;  %v1518_v19 = vxor.u32 2147483648, %v2187_v61  ;;  %v1904_v32 = vadd.s32 3, %v1900_v8  ;;  %v1214_v8 = vstv %s2063_s23 }
 0x1fa   :  { %v1522_v47 = vsel %vm1520_vm15, %v1521_v5, %v2187_v61 }
 0x1fb   :  { %v2091_v38 = vmin.u32 %v1877_v40, %v1875_v30  ;;  %v1519_v53 = vsel %vm1517_vm1, %v2185_v52, %v1518_v19  ;;  %v1905_v42 = vand.u32 3, %v1904_v32  ;;  %v824_v52 = vstv %s2047_s21 }
 0x1fc   :  { %v1523_v50 = vsel %vm1516_vm2, %v1519_v53, %v1522_v47  ;;  %v828_v40 = vstv %s2048_s22  ;;  %v1218_v32 = vstv %s2064_s24 }
 0x1fd   :  { %v1879_v37 = vclz %v2091_v38  ;;  %v1524_v13 = vsel %vm1513_vm3, nan, %v1523_v50  ;;  %vm1910_vm7 = vcmp.eq.s32.totalorder %v1905_v42, 2  ;;  %vm1907_vm8 = vcmp.eq.s32.totalorder %v1905_v42, 0 }
 0x1fe   :  { %1527 = vperm.xlu1 %2151, %v1524_v13   ;;  %vm1906_vm9 = vcmp.lt.s32.totalorder %v1905_v42, 2 }
 0x1ff   :  { %v2092_v62 = vadd.s32 4294967294, %v1879_v37 }
 0x201   :  { %vm2093_vm4 = vcmp.lt.s32.totalorder %v2092_v62, 0 }
 0x202   :  { %v1882_v34 = vsel %vm2093_vm4, 0, %v2092_v62  ;;  %v943_v62 = vpop.permute.xlu0 %942 }
 0x203   :  { %v1883_v24 = vsub.s32 32, %v1882_v34  ;;  %v1884_v16 = vshll.u32 %v1875_v30, %v1882_v34  ;;  %v1887_v57 = vsub.s32 4294967266, %v1882_v34 }
 0x205   :  { %v1885_v26 = vshrl.u32 %v1867_v36, %v1883_v24  ;;  %v1888_v41 = vadd.s32 127, %v1887_v57  ;;  %v1023_v57 = vstv %s2056_s5 }
 0x207   :  { %v1886_v54 = vor.u32 %v1885_v26, %v1884_v16  ;;  %v1889_v23 = vshll.u32 %v1888_v41, 23  ;;  %v1019_v16 = vstv %s2055_s4 }
 0x209   :  { %v1890_v22 = vor.u32 4788187, %v1889_v23  ;;  %v1893_v39 = vcvt.s32.f32 %v1886_v54 }
 0x20b   :  { %v1891_v29 = vand.u32 2147483647, %v1890_v22 }
 0x20d   :  { %v1894_v55 = vmul.f32 %v1893_v39, %v1891_v29 }
 0x20f   :  { %v1895_v35 = vxor.u32 2147483648, %v1894_v55 }
 0x211   :  { %v1896_v33 = vsel %vm1813_vm5, %v1895_v35, %v1894_v55 }
 0x212   :  { %v1899_v9 = vsel %vm1812_vm6, %v3100_v59, %v1896_v33  ;;  %v630_v59 = vmul.f32 %v629_v3, %v3232_v63  ;;  %v748_v63 = vpop.permute.xlu1 %747  ;;  %v1409_v3 = vstv %s2071_s25 }
 0x213   :  { %2188 = vcosq.f32 %v1899_v9 }
 0x214   :  { %2190 = vsinq.f32 %v1899_v9 }
 0x216   :  { %v1138_v35 = vpop.permute.xlu1 %1137 }
 0x21d   :  { %v2189_v4 = vpop.eup %2188 }
 0x21e   :  { %v2191_v44 = vpop.eup %2190  ;;  %v1911_v1 = vxor.u32 2147483648, %v2189_v4 }
 0x21f   :  { %v1908_v10 = vxor.u32 2147483648, %v2191_v44 }
 0x220   :  { %v1912_v43 = vsel %vm1910_vm7, %v1911_v1, %v2191_v44 }
 0x221   :  { %v1909_v18 = vsel %vm1907_vm8, %v2189_v4, %v1908_v10 }
 0x222   :  { %v1913_v15 = vsel %vm1906_vm9, %v1909_v18, %v1912_v43 }
 0x223   :  { %v1914_v14 = vsel %vm1903_vm10, nan, %v1913_v15 }
 0x224   :  { %1917 = vperm.xlu1 %2151, %v1914_v14  }
 0x2c3   :  { %v621_v28 = vpop.f32.mrb[2].mxu0 }
 0x2c4   :  { %v622_v51 = vadd.f32 %v621_v28, %v553_v46  ;;  %v623_v25 = vpop.f32.mrb[3].mxu0 }
 0x2c5   :  { %v624_v12 = vadd.f32 %v623_v25, %v553_v46  ;;  %v1333_v46 = vpop.permute.xlu0 %1332 }
 0x2c6   :  { %v626_v31 = vadd.f32 %v622_v51, %v2791_v7 }
 0x2c7   :  { %v627_v17 = vadd.f32 %v624_v12, %v2793_v60 }
 0x2c8   :  { %v634_v20 = vmul.f32 %v633_v58, %v626_v31 }
 0x2c9   :  { %v635_v49 = vmul.f32 %v633_v58, %v627_v17  ;;  %v1413_v58 = vstv %s2072_s26 }
 0x2ca   :  { %v636_v45 = vadd.f32 %v634_v20, %v630_v59 }
 0x2cb   :  { %v637_v21 = vadd.f32 %v635_v49, %v631_v48 }
 0x2cc   :  { %v825_v38 = vmul.f32 %v824_v52, %v636_v45 }
 0x2cd   :  { %750 = vmatprep.subr.mxu1 %v637_v21  ;;  %v826_v37 = vmul.f32 %v824_v52, %v637_v21  ;;  %v1604_v52 = vstv %s2079_s27 }
 0x2ce   :  { %751 = vmatpush1.msra.mxu1 %v636_v45 }
 0x2cf   :  { %2046 = vmatmul.mubr.msk.f32.vlgmr.msra.gmra.mrb[2].mxu1 %vm161_vm0, %v3273_v56 }
 0x2d0   :  { %1204 = vmatprep.mubr.f32.mxu1 %v2281_v0 }
 0x3a2   :  { %v816_v6 = vpop.f32.mrb[2].mxu1 }
 0x3a3   :  { %v817_v30 = vadd.f32 %v816_v6, %v748_v63  ;;  %v818_v11 = vpop.f32.mrb[3].mxu1 }
 0x3a4   :  { %v819_v61 = vadd.f32 %v818_v11, %v748_v63  ;;  %v1528_v63 = vpop.permute.xlu1 %1527 }
 0x3a5   :  { %v821_v5 = vadd.f32 %v817_v30, %v2791_v7 }
 0x3a6   :  { %v822_v19 = vadd.f32 %v819_v61, %v2793_v60 }
 0x3a7   :  { %v829_v47 = vmul.f32 %v828_v40, %v821_v5 }
 0x3a8   :  { %v830_v53 = vmul.f32 %v828_v40, %v822_v19  ;;  %v1608_v40 = vstv %s2080_s28 }
 0x3a9   :  { %v831_v50 = vadd.f32 %v829_v47, %v825_v38 }
 0x3aa   :  { %v832_v13 = vadd.f32 %v830_v53, %v826_v37 }
 0x3ab   :  { %v1020_v23 = vmul.f32 %v1019_v16, %v831_v50 }
 0x3ac   :  { %945 = vmatprep.subr.mxu0 %v832_v13  ;;  %v1021_v29 = vmul.f32 %v1019_v16, %v832_v13  ;;  %v1803_v16 = vstv %s2088_s1 }
 0x3ad   :  { %946 = vmatpush1.msra.mxu0 %v831_v50 }
 0x3ae   :  { %2054 = vmatmul.mubr.msk.f32.vlgmr.msra.gmra.mrb[4].mxu0 %vm161_vm0, %v3273_v56 }
 0x3af   :  { %1399 = vmatprep.mubr.f32.mxu0 %v2281_v0 }
 0x481   :  { %v1011_v36 = vpop.f32.mrb[4].mxu0 }
 0x482   :  { %v1012_v34 = vadd.f32 %v1011_v36, %v943_v62  ;;  %v1013_v24 = vpop.f32.mrb[5].mxu0 }
 0x483   :  { %v1014_v26 = vadd.f32 %v1013_v24, %v943_v62  ;;  %v1799_v24 = vstv %s2087_s29 }
 0x484   :  { %v1016_v41 = vadd.f32 %v1012_v34, %v2791_v7 }
 0x485   :  { %v1017_v54 = vadd.f32 %v1014_v26, %v2793_v60 }
 0x486   :  { %v1024_v22 = vmul.f32 %v1023_v57, %v1016_v41 }
 0x487   :  { %v1025_v39 = vmul.f32 %v1023_v57, %v1017_v54 }
 0x488   :  { %v1026_v27 = vadd.f32 %v1024_v22, %v1020_v23 }
 0x489   :  { %v1027_v55 = vadd.f32 %v1025_v39, %v1021_v29 }
 0x48a   :  { %v1215_v1 = vmul.f32 %v1214_v8, %v1026_v27 }
 0x48b   :  { %1140 = vmatprep.subr.mxu1 %v1027_v55  ;;  %v1216_v18 = vmul.f32 %v1214_v8, %v1027_v55  ;;  %v1918_v55 = vpop.permute.xlu1 %1917  ;;  %v1998_v8 = vstv %s2096_s8 }
 0x48c   :  { %1141 = vmatpush1.msra.mxu1 %v1026_v27 }
 0x48d   :  { %2062 = vmatmul.mubr.msk.f32.vlgmr.msra.gmra.mrb[4].mxu1 %vm161_vm0, %v3273_v56 }
 0x48e   :  { %1594 = vmatprep.mubr.f32.mxu1 %v2281_v0 }
 0x560   :  { %v1206_v2 = vpop.f32.mrb[4].mxu1 }
 0x561   :  { %v1207_v33 = vadd.f32 %v1206_v2, %v1138_v35  ;;  %v1208_v9 = vpop.f32.mrb[5].mxu1 }
 0x562   :  { %v1209_v42 = vadd.f32 %v1208_v9, %v1138_v35  ;;  %v1994_v9 = vstv %s2095_s30 }
 0x563   :  { %v1211_v4 = vadd.f32 %v1207_v33, %v2791_v7 }
 0x564   :  { %v1212_v44 = vadd.f32 %v1209_v42, %v2793_v60 }
 0x565   :  { %v1219_v10 = vmul.f32 %v1218_v32, %v1211_v4 }
 0x566   :  { %v1220_v43 = vmul.f32 %v1218_v32, %v1212_v44 }
 0x567   :  { %v1221_v15 = vadd.f32 %v1219_v10, %v1215_v1 }
 0x568   :  { %v1222_v14 = vadd.f32 %v1220_v43, %v1216_v18 }
 0x569   :  { %v1410_v59 = vmul.f32 %v1409_v3, %v1221_v15 }
 0x56a   :  { %1335 = vmatprep.subr.mxu0 %v1222_v14  ;;  %v1411_v48 = vmul.f32 %v1409_v3, %v1222_v14 }
 0x56b   :  { %1336 = vmatpush1.msra.mxu0 %v1221_v15 }
 0x56c   :  { %2070 = vmatmul.mubr.msk.f32.vlgmr.msra.gmra.mrb[6].mxu0 %vm161_vm0, %v3273_v56 }
 0x56d   :  { %1789 = vmatprep.mubr.f32.mxu0 %v2281_v0 }
 0x63f   :  { %v1401_v28 = vpop.f32.mrb[6].mxu0 }
 0x640   :  { %v1402_v51 = vadd.f32 %v1401_v28, %v1333_v46  ;;  %v1403_v25 = vpop.f32.mrb[7].mxu0 }
 0x641   :  { %v1404_v12 = vadd.f32 %v1403_v25, %v1333_v46 }
 0x642   :  { %v1406_v31 = vadd.f32 %v1402_v51, %v2791_v7 }
 0x643   :  { %v1407_v17 = vadd.f32 %v1404_v12, %v2793_v60 }
 0x644   :  { %v1414_v20 = vmul.f32 %v1413_v58, %v1406_v31 }
 0x645   :  { %v1415_v49 = vmul.f32 %v1413_v58, %v1407_v17 }
 0x646   :  { %v1416_v45 = vadd.f32 %v1414_v20, %v1410_v59 }
 0x647   :  { %v1417_v21 = vadd.f32 %v1415_v49, %v1411_v48 }
 0x648   :  { %v1605_v38 = vmul.f32 %v1604_v52, %v1416_v45 }
 0x649   :  { %1530 = vmatprep.subr.mxu1 %v1417_v21  ;;  %v1606_v37 = vmul.f32 %v1604_v52, %v1417_v21 }
 0x64a   :  { %1531 = vmatpush1.msra.mxu1 %v1416_v45 }
 0x64b   :  { %2078 = vmatmul.mubr.msk.f32.vlgmr.msra.gmra.mrb[6].mxu1 %vm161_vm0, %v3273_v56 }
 0x64c   :  { %1984 = vmatprep.mubr.f32.mxu1 %v2281_v0  ;;  %v1723_v0 = vpop.permute.xlu0 %1722 }
 0x71e   :  { %v1596_v6 = vpop.f32.mrb[6].mxu1 }
 0x71f   :  { %v1597_v30 = vadd.f32 %v1596_v6, %v1528_v63  ;;  %v1598_v11 = vpop.f32.mrb[7].mxu1 }
 0x720   :  { %v1599_v61 = vadd.f32 %v1598_v11, %v1528_v63 }
 0x721   :  { %v1601_v5 = vadd.f32 %v1597_v30, %v2791_v7 }
 0x722   :  { %v1602_v19 = vadd.f32 %v1599_v61, %v2793_v60 }
 0x723   :  { %v1609_v47 = vmul.f32 %v1608_v40, %v1601_v5 }
 0x724   :  { %v1610_v53 = vmul.f32 %v1608_v40, %v1602_v19 }
 0x725   :  { %v1611_v50 = vadd.f32 %v1609_v47, %v1605_v38 }
 0x726   :  { %v1612_v13 = vadd.f32 %v1610_v53, %v1606_v37 }
 0x727   :  { %v1800_v54 = vmul.f32 %v1799_v24, %v1611_v50 }
 0x728   :  { %1725 = vmatprep.subr.mxu0 %v1612_v13  ;;  %v1801_v39 = vmul.f32 %v1799_v24, %v1612_v13 }
 0x729   :  { %1726 = vmatpush1.msra.mxu0 %v1611_v50 }
 0x72a   :  { %2086 = vmatmul.mubr.msk.f32.vlgmr.msra.gmra.mrb[8].mxu0 %vm161_vm0, %v3273_v56 }
 0x7fd   :  { %v1791_v62 = vpop.f32.mrb[8].mxu0 }
 0x7fe   :  { %v1792_v36 = vadd.f32 %v1791_v62, %v1723_v0  ;;  %v1793_v34 = vpop.f32.mrb[9].mxu0 }
 0x7ff   :  { %v1794_v57 = vadd.f32 %v1793_v34, %v1723_v0 }
 0x800   :  { %v1796_v26 = vadd.f32 %v1792_v36, %v2791_v7 }
 0x801   :  { %v1797_v41 = vadd.f32 %v1794_v57, %v2793_v60 }
 0x802   :  { %v1804_v23 = vmul.f32 %v1803_v16, %v1796_v26 }
 0x803   :  { %v1805_v22 = vmul.f32 %v1803_v16, %v1797_v41 }
 0x804   :  { %v1806_v29 = vadd.f32 %v1804_v23, %v1800_v54 }
 0x805   :  { %v1807_v27 = vadd.f32 %v1805_v22, %v1801_v39 }
 0x806   :  { %v1995_v1 = vmul.f32 %v1994_v9, %v1806_v29 }
 0x807   :  { %1920 = vmatprep.subr.mxu1 %v1807_v27  ;;  %v1996_v10 = vmul.f32 %v1994_v9, %v1807_v27 }
 0x808   :  { %1921 = vmatpush1.msra.mxu1 %v1806_v29 }
 0x809   :  { %2094 = vmatmul.mubr.msk.f32.vlgmr.msra.gmra.mrb[8].mxu1 %vm161_vm0, %v3273_v56 }
 0x8dc   :  { %v1986_v35 = vpop.f32.mrb[8].mxu1 }
 0x8dd   :  { %v1987_v2 = vadd.f32 %v1986_v35, %v1918_v55  ;;  %v1988_v33 = vpop.f32.mrb[9].mxu1 }
 0x8de   :  { %v1989_v32 = vadd.f32 %v1988_v33, %v1918_v55 }
 0x8df   :  { %v1991_v42 = vadd.f32 %v1987_v2, %v2791_v7 }
 0x8e0   :  { %v1992_v4 = vadd.f32 %v1989_v32, %v2793_v60 }
 0x8e1   :  { %v1999_v44 = vmul.f32 %v1998_v8, %v1991_v42 }
 0x8e2   :  { %v2000_v43 = vmul.f32 %v1998_v8, %v1992_v4 }
 0x8e3   :  { %v2001_v56 = vadd.f32 %v1999_v44, %v1995_v1 }
 0x8e4   :  { %v2002_v18 = vadd.f32 %v2000_v43, %v1996_v10 }
 0x8e5   :  { %2003 = vst [vmem:[#allocation9] sm:$0xff] %v2001_v56 }
 0x8e6   :  { %2004 = vst [vmem:[#allocation9 + $0x8] sm:$0xff] %v2002_v18 }
 0x8e7   :  { %2260 = shalt.err (!%p2257_p7)
}
 0x8e8   :  { %s2261_s13 = scalar_lea.hbm %s3325_s7, 256 }
 0x8e9   :  { %p2262_p8 = scmp.ne.s32.totalorder %s3325_s7, %s2261_s13  ;;  %p2265_p9 = scmp.lt.u32.totalorder %s2261_s13, %s3325_s7 }
 0x8eb   :  { %p2267_p10 = pnand %p2265_p9, %p2262_p8 }
 0x8ed   :  { %2270 = shalt.err (!%p2267_p10)
}
 0x8ee   :  { %2014 = dma.vmem_to_hbm [thread:$0]  %s2012_s10, 256, %s3325_s7, [#allocation8]  }
 0x8ef   :  { %2275 = dma.done.wait [#allocation8], 256  }
 0x8f0   :  { %2276 = vsyncadd [#allocation8], 4294967040 }
 0x8f1   :  { %2018 = vsyncpa [#allocation7], 1 }
 0x8f2   :  { %2019 = vsyncpa [#allocation8], 1 }

</bundles_post_ra>
